<compile_context>
chip_gen: v7x
topology: tpu7x:2x2x1
jax: 0.10.0
libtpu: 0.0.40
codegen_flags: <defaults>
</compile_context>

<pallas_src>
import functools
import math

import jax
import jax.numpy as jnp
import numpy as np
from jax.experimental import pallas as pl
from jax.experimental.pallas import tpu as pltpu

# hyper-parameters fixed by the PyTorch script
D_MODEL = 64
N_HEADS = 8
D_K = D_V = 64
D_FF = 512
KERNEL_SIZE = 3
LN_EPS = 1e-5
BN_EPS = 1e-5


def encoder_layer_kernel(
    x_ref, bias_ref, nf_ref, nl_ref,
    wqkv_ref, wo_ref,
    ln1_g_ref, ln1_b_ref,
    dw_w_ref, dw_b_ref,
    bn_scale_ref, bn_shift_ref,
    scalars_ref,
    ffn_w1_ref, ffn_w2_ref,
    ln2_g_ref, ln2_b_ref,
    out_ref, attn_ref,
    *, bt, seq_len,
):
    L = seq_len
    N = bt * L
    HDK = N_HEADS * D_K
    bf16 = jnp.bfloat16

    x = x_ref[...].reshape(N, D_MODEL)          # [N, D] f32
    bias = bias_ref[0]                          # [N, N] f32 additive mask

    # ---------------- fused QKV projection (one MXU launch) ----------------
    x_bf = x.astype(bf16)
    qkv = jnp.dot(x_bf, wqkv_ref[...],
                  preferred_element_type=jnp.float32)      # [N, 3*H*Dk] f32

    scale = 1.0 / math.sqrt(D_K)
    wo = wo_ref[...]                            # [H*Dv, D] bf16 (hoisted load)
    mha = x                                     # residual, accumulate in f32
    for h in range(N_HEADS):                    # static unroll over heads
        qh = qkv[:, h * D_K:(h + 1) * D_K]
        kh = qkv[:, HDK + h * D_K: HDK + (h + 1) * D_K]
        vh = qkv[:, 2 * HDK + h * D_V: 2 * HDK + (h + 1) * D_V]

        s = jnp.dot(qh.astype(bf16), kh.T.astype(bf16),
                    preferred_element_type=jnp.float32)
        s = s * scale + bias                    # mask bias hoisted out of loop
        m = jnp.max(s, axis=-1, keepdims=True)
        e = jnp.exp(s - m)
        l = jnp.sum(e, axis=-1, keepdims=True)
        r = pl.reciprocal(l, approx=True)       # EUP slot
        r = r * (2.0 - l * r)                   # one Newton step -> f32 accurate
        p = e * r

        # lane-dense attn slab: one slice store per head into [N, H*N]
        attn_ref[0, :, h * N:(h + 1) * N] = p

        ctx = jnp.dot(p.astype(bf16), vh.astype(bf16),
                      preferred_element_type=jnp.float32)
        # fold W_O per head: no lane concat of per-head contexts
        mha = mha + jnp.dot(ctx.astype(bf16), wo[h * D_V:(h + 1) * D_V, :],
                            preferred_element_type=jnp.float32)

    # ---------------- Conformer-style conv module (eval mode) ----------------
    mu = jnp.mean(mha, axis=-1, keepdims=True)
    var = jnp.mean((mha - mu) ** 2, axis=-1, keepdims=True)
    xn = (mha - mu) * jax.lax.rsqrt(var + LN_EPS) * ln1_g_ref[...] + ln1_b_ref[...]

    sc = scalars_ref[...]                       # [8, D] broadcast scalar rows
    # pointwise Conv2d(1->2, k=1) + GLU (sigmoid gate)
    x0 = xn * sc[0:1, :] + sc[2:3, :]
    x1 = xn * sc[1:2, :] + sc[3:4, :]
    g = x0 * (1.0 / (1.0 + jnp.exp(-x1)))       # [N, D]

    # depthwise Conv1d over sequence axis (kernel=3, pad=1, groups=D):
    # XLU sublane rotations + precomputed 0/1 sequence-edge masks.
    g_prev = pltpu.roll(g, 1, axis=0) * nf_ref[...]
    g_next = pltpu.roll(g, N - 1, axis=0) * nl_ref[...]
    dw = dw_w_ref[...]                          # [3, D]
    y = (g_prev * dw[0:1, :] + g * dw[1:2, :] + g_next * dw[2:3, :]
         + dw_b_ref[...])

    # BatchNorm1d (running stats), ReLU, pointwise Conv2d(1->1, k=1)
    y = y * bn_scale_ref[...] + bn_shift_ref[...]
    y = jnp.maximum(y, 0.0)
    y = y * sc[4:5, :] + sc[5:6, :]
    conv_out = y + mha                          # + residual (Dropout == id)

    # ---------------- Position-wise feed-forward + LayerNorm ----------------
    h1 = jnp.maximum(
        jnp.dot(conv_out.astype(bf16), ffn_w1_ref[...],
                preferred_element_type=jnp.float32), 0.0)
    h2 = jnp.dot(h1.astype(bf16), ffn_w2_ref[...],
                 preferred_element_type=jnp.float32)
    s2 = h2 + conv_out
    mu2 = jnp.mean(s2, axis=-1, keepdims=True)
    var2 = jnp.mean((s2 - mu2) ** 2, axis=-1, keepdims=True)
    y2 = (s2 - mu2) * jax.lax.rsqrt(var2 + LN_EPS) * ln2_g_ref[...] + ln2_b_ref[...]
    out_ref[...] = y2.reshape(bt, L, D_MODEL)


def _pick_block_batch(B, L):
    """Batch elements per grid step: fill the MXU M dimension (target >= 128
    rows) while keeping >= 2 parallel grid steps so both v7x TCs get work."""
    target = max(1, 128 // L)
    best = 1
    for bt in range(1, B + 1):
        if B % bt != 0 or bt > target:
            continue
        if B // bt >= 2 or B == 1:
            best = bt
    return best


def encoder_layer(x, mask_bool, P, block_batch=None):
    B, L, D = x.shape
    assert D == D_MODEL
    bt = block_batch if block_batch is not None else _pick_block_batch(B, L)
    assert B % bt == 0
    G = B // bt
    N = bt * L
    HDK = N_HEADS * D_K

    # additive attention bias (float mask, computed once outside the kernel),
    # block-diagonal over the bt batch elements packed into one tile.
    bias = jnp.where(mask_bool, jnp.float32(-1e9),
                     jnp.float32(0.0)).reshape(G, bt, L, L)
    same = jnp.arange(bt)[:, None] == jnp.arange(bt)[None, :]
    bias_big = jnp.where(same[None, :, None, :, None],
                         bias[:, :, :, None, :],
                         jnp.float32(-1e9)).reshape(G, N, N)

    # 0/1 sequence-edge masks for the depthwise conv (zero padding at every
    # per-batch-element sequence boundary inside the flattened [N, D] tile)
    pos = np.arange(N) % L
    nf = jnp.asarray((pos != 0).astype(np.float32)).reshape(N, 1)
    nl = jnp.asarray((pos != L - 1).astype(np.float32)).reshape(N, 1)

    # fused QKV weight; matmul weights in bf16 (f32 accumulation on the MXU)
    wqkv = jnp.concatenate([P["wq"], P["wk"], P["wv"]], axis=1).astype(jnp.bfloat16)
    wo = P["wo"].astype(jnp.bfloat16)
    w1 = P["ffn_w1"].astype(jnp.bfloat16)
    w2 = P["ffn_w2"].astype(jnp.bfloat16)

    kernel = functools.partial(encoder_layer_kernel, bt=bt, seq_len=L)
    rep2 = lambda g: (0, 0)

    in_specs = [
        pl.BlockSpec((bt, L, D), lambda g: (g, 0, 0)),     # x
        pl.BlockSpec((1, N, N), lambda g: (g, 0, 0)),      # additive mask bias
        pl.BlockSpec((N, 1), rep2),                        # not-first-row mask
        pl.BlockSpec((N, 1), rep2),                        # not-last-row mask
        pl.BlockSpec((D, 3 * HDK), rep2),                  # fused W_QKV (bf16)
        pl.BlockSpec((HDK, D), rep2),                      # W_O (bf16)
        pl.BlockSpec((1, D), rep2),                        # conv LN gamma
        pl.BlockSpec((1, D), rep2),                        # conv LN beta
        pl.BlockSpec((KERNEL_SIZE, D), rep2),              # dw-conv weight
        pl.BlockSpec((1, D), rep2),                        # dw-conv bias
        pl.BlockSpec((1, D), rep2),                        # BN scale
        pl.BlockSpec((1, D), rep2),                        # BN shift
        pl.BlockSpec((8, D), rep2),                        # pw-conv scalars
        pl.BlockSpec((D, D_FF), rep2),                     # FFN W1 (bf16)
        pl.BlockSpec((D_FF, D), rep2),                     # FFN W2 (bf16)
        pl.BlockSpec((1, D), rep2),                        # final LN gamma
        pl.BlockSpec((1, D), rep2),                        # final LN beta
    ]
    out_specs = (
        pl.BlockSpec((bt, L, D), lambda g: (g, 0, 0)),
        pl.BlockSpec((1, N, N_HEADS * N), lambda g: (g, 0, 0)),
    )
    out_shape = (
        jax.ShapeDtypeStruct((B, L, D), jnp.float32),
        jax.ShapeDtypeStruct((G, N, N_HEADS * N), jnp.float32),
    )
    out, attn_big = pl.pallas_call(
        kernel,
        grid=(G,),
        in_specs=in_specs,
        out_specs=out_specs,
        out_shape=out_shape,
        compiler_params=pltpu.CompilerParams(dimension_semantics=("parallel",)),
    )(x, bias_big, nf, nl, wqkv, wo,
      P["ln1_g"], P["ln1_b"], P["dw_w"], P["dw_b"],
      P["bn_scale"], P["bn_shift"], P["scalars"],
      w1, w2, P["ln2_g"], P["ln2_b"])

    # lane-dense kernel layout [G, N, H*N]  ->  [B, H, L, L]
    A = attn_big.reshape(G, bt, L, N_HEADS, bt, L)
    parts = [A[:, b, :, :, b, :] for b in range(bt)]        # each [G, L, H, L]
    attn = (jnp.stack(parts, axis=1)
            .transpose(0, 1, 3, 2, 4)
            .reshape(B, N_HEADS, L, L))
    return out, attn


# --------------------- pure-JAX reference (for checking) ---------------------
def reference_forward(x, mask_bool, P):
    bf = jnp.bfloat16
    f32 = jnp.float32
    B, L, D = x.shape

    def heads(t):
        return t.reshape(B, L, N_HEADS, D_K).transpose(0, 2, 1, 3)

    xb = x.astype(bf)
    q = heads(jnp.einsum("bld,de->ble", xb, P["wq"].astype(bf),
                         preferred_element_type=f32))
    k = heads(jnp.einsum("bld,de->ble", xb, P["wk"].astype(bf),
                         preferred_element_type=f32))
    v = heads(jnp.einsum("bld,de->ble", xb, P["wv"].astype(bf),
                         preferred_element_type=f32))
    s = jnp.einsum("bhqd,bhkd->bhqk", q.astype(bf), k.astype(bf),
                   preferred_element_type=f32) / math.sqrt(D_K)
    s = jnp.where(mask_bool[:, None, :, :], -1e9, s)
    attn = jax.nn.softmax(s, axis=-1)
    ctx = jnp.einsum("bhqk,bhkd->bhqd", attn.astype(bf), v.astype(bf),
                     preferred_element_type=f32).transpose(0, 2, 1, 3)
    ctx = ctx.reshape(B, L, N_HEADS * D_V)
    mha = jnp.einsum("ble,ed->bld", ctx.astype(bf), P["wo"].astype(bf),
                     preferred_element_type=f32) + x

    mu = mha.mean(-1, keepdims=True)
    var = ((mha - mu) ** 2).mean(-1, keepdims=True)
    xn = (mha - mu) / jnp.sqrt(var + LN_EPS) * P["ln1_g"][0] + P["ln1_b"][0]
    sc = P["scalars"]
    x0 = xn * sc[0, 0] + sc[2, 0]
    x1 = xn * sc[1, 0] + sc[3, 0]
    g = x0 * jax.nn.sigmoid(x1)
    gp = jnp.pad(g, ((0, 0), (1, 1), (0, 0)))
    dw = P["dw_w"]
    y = (gp[:, :-2] * dw[0] + gp[:, 1:-1] * dw[1] + gp[:, 2:] * dw[2]
         + P["dw_b"][0])
    y = y * P["bn_scale"][0] + P["bn_shift"][0]
    y = jnp.maximum(y, 0.0)
    y = y * sc[4, 0] + sc[5, 0]
    conv_out = y + mha

    h1 = jnp.maximum(
        jnp.einsum("bld,df->blf", conv_out.astype(bf), P["ffn_w1"].astype(bf),
                   preferred_element_type=f32), 0.0)
    h2 = jnp.einsum("blf,fd->bld", h1.astype(bf), P["ffn_w2"].astype(bf),
                    preferred_element_type=f32)
    s2 = h2 + conv_out
    mu2 = s2.mean(-1, keepdims=True)
    var2 = ((s2 - mu2) ** 2).mean(-1, keepdims=True)
    out = (s2 - mu2) / jnp.sqrt(var2 + LN_EPS) * P["ln2_g"][0] + P["ln2_b"][0]
    return out, attn


def make_params(key):
    ks = jax.random.split(key, 12)

    def u(k, shape, fan_in):
        lim = 1.0 / math.sqrt(fan_in)
        return jax.random.uniform(k, shape, jnp.float32, -lim, lim)

    P = {}
    # attention projections (stored transposed: x @ W)
    P["wq"] = u(ks[0], (D_MODEL, N_HEADS * D_K), D_MODEL)
    P["wk"] = u(ks[1], (D_MODEL, N_HEADS * D_K), D_MODEL)
    P["wv"] = u(ks[2], (D_MODEL, N_HEADS * D_V), D_MODEL)
    P["wo"] = u(ks[3], (N_HEADS * D_V, D_MODEL), N_HEADS * D_V)
    # ConvModule LayerNorm (torch default init)
    P["ln1_g"] = jnp.ones((1, D_MODEL), jnp.float32)
    P["ln1_b"] = jnp.zeros((1, D_MODEL), jnp.float32)
    # depthwise Conv1d weight [C,1,K] -> stored as [K, C]
    P["dw_w"] = u(ks[4], (KERNEL_SIZE, D_MODEL), KERNEL_SIZE)
    P["dw_b"] = u(ks[5], (1, D_MODEL), KERNEL_SIZE)
    # BatchNorm1d eval (running mean=0, var=1, gamma=1, beta=0)
    bn_scale = 1.0 / math.sqrt(1.0 + BN_EPS)
    P["bn_scale"] = jnp.full((1, D_MODEL), bn_scale, jnp.float32)
    P["bn_shift"] = jnp.zeros((1, D_MODEL), jnp.float32)
    # pointwise 1x1 conv scalars, packed and broadcast along lanes:
    # rows = [pw1_w0, pw1_w1, pw1_b0, pw1_b1, pw2_w, pw2_b, 0, 0]
    pw1_w = jax.random.normal(ks[6], (2,), jnp.float32) * 0.5
    pw1_b = jax.random.normal(ks[7], (2,), jnp.float32) * 0.1
    pw2_w = jax.random.normal(ks[8], (1,), jnp.float32) * 0.5
    pw2_b = jax.random.normal(ks[9], (1,), jnp.float32) * 0.1
    vec = jnp.concatenate([pw1_w, pw1_b, pw2_w, pw2_b,
                           jnp.zeros((2,), jnp.float32)])
    P["scalars"] = jnp.ones((8, D_MODEL), jnp.float32) * vec[:, None]
    # FFN
    P["ffn_w1"] = u(ks[10], (D_MODEL, D_FF), D_MODEL)
    P["ffn_w2"] = u(ks[11], (D_FF, D_MODEL), D_FF)
    # final LayerNorm (PyTorch re-creates nn.LayerNorm(d_model) every forward,
    # so gamma=1 / beta=0 is exact; kept as explicit params for generality)
    P["ln2_g"] = jnp.ones((1, D_MODEL), jnp.float32)
    P["ln2_b"] = jnp.zeros((1, D_MODEL), jnp.float32)
    return P


if __name__ == "__main__":
    B, L = 2, 8
    key = jax.random.PRNGKey(0)
    k_x, k_m, k_p = jax.random.split(key, 3)

    x = jax.random.normal(k_x, (B, L, D_MODEL), jnp.float32)
    mask = jax.random.bernoulli(k_m, 0.3, (B, L, L))
    eye = jnp.eye(L, dtype=bool)[None]
    mask = jnp.where(eye, False, mask)       # keep diagonal unmasked
    P = make_params(k_p)

    out, attn = encoder_layer(x, mask, P)
    jax.block_until_ready((out, attn))

    ref_out, ref_attn = reference_forward(x, mask, P)
    np.testing.assert_allclose(np.asarray(out), np.asarray(ref_out),
                               rtol=1e-3, atol=1e-3)
    np.testing.assert_allclose(np.asarray(attn), np.asarray(ref_attn),
                               rtol=1e-3, atol=1e-3)
    print("KERNEL_OK")
</pallas_src>

<mosaic_0001>
module attributes {stable_mosaic.version = 11 : i64} {
  func.func @encoder_layer_kernel(%arg0: i32, %arg1: memref<1x8x64xf32, #tpu.memory_space<vmem>>, %arg2: memref<1x8x8xf32, #tpu.memory_space<vmem>>, %arg3: memref<8x1xf32, #tpu.memory_space<vmem>>, %arg4: memref<8x1xf32, #tpu.memory_space<vmem>>, %arg5: memref<64x1536xbf16, #tpu.memory_space<vmem>>, %arg6: memref<512x64xbf16, #tpu.memory_space<vmem>>, %arg7: memref<1x64xf32, #tpu.memory_space<vmem>>, %arg8: memref<1x64xf32, #tpu.memory_space<vmem>>, %arg9: memref<3x64xf32, #tpu.memory_space<vmem>>, %arg10: memref<1x64xf32, #tpu.memory_space<vmem>>, %arg11: memref<1x64xf32, #tpu.memory_space<vmem>>, %arg12: memref<1x64xf32, #tpu.memory_space<vmem>>, %arg13: memref<8x64xf32, #tpu.memory_space<vmem>>, %arg14: memref<64x512xbf16, #tpu.memory_space<vmem>>, %arg15: memref<512x64xbf16, #tpu.memory_space<vmem>>, %arg16: memref<1x64xf32, #tpu.memory_space<vmem>>, %arg17: memref<1x64xf32, #tpu.memory_space<vmem>>, %arg18: memref<1x8x64xf32, #tpu.memory_space<vmem>>, %arg19: memref<1x8x64xf32, #tpu.memory_space<vmem>>) attributes {dimension_semantics = [#tpu.dimension_semantics<parallel>], iteration_bounds = array<i64: 2>, scalar_prefetch = 0 : i64, scratch_operands = 0 : i64, tpu.core_type = #tpu.core_type<tc>, window_params = [{transform_indices = @transform_0, window_bounds = array<i64: 1, 8, 64>}, {transform_indices = @transform_1, window_bounds = array<i64: 1, 8, 8>}, {pipeline_mode = #tpu.pipeline_mode<synchronous>, transform_indices = @transform_2, window_bounds = array<i64: 8, 1>}, {pipeline_mode = #tpu.pipeline_mode<synchronous>, transform_indices = @transform_3, window_bounds = array<i64: 8, 1>}, {pipeline_mode = #tpu.pipeline_mode<synchronous>, transform_indices = @transform_4, window_bounds = array<i64: 64, 1536>}, {pipeline_mode = #tpu.pipeline_mode<synchronous>, transform_indices = @transform_5, window_bounds = array<i64: 512, 64>}, {pipeline_mode = #tpu.pipeline_mode<synchronous>, transform_indices = @transform_6, window_bounds = array<i64: 1, 64>}, {pipeline_mode = #tpu.pipeline_mode<synchronous>, transform_indices = @transform_7, window_bounds = array<i64: 1, 64>}, {pipeline_mode = #tpu.pipeline_mode<synchronous>, transform_indices = @transform_8, window_bounds = array<i64: 3, 64>}, {pipeline_mode = #tpu.pipeline_mode<synchronous>, transform_indices = @transform_9, window_bounds = array<i64: 1, 64>}, {pipeline_mode = #tpu.pipeline_mode<synchronous>, transform_indices = @transform_10, window_bounds = array<i64: 1, 64>}, {pipeline_mode = #tpu.pipeline_mode<synchronous>, transform_indices = @transform_11, window_bounds = array<i64: 1, 64>}, {pipeline_mode = #tpu.pipeline_mode<synchronous>, transform_indices = @transform_12, window_bounds = array<i64: 8, 64>}, {pipeline_mode = #tpu.pipeline_mode<synchronous>, transform_indices = @transform_13, window_bounds = array<i64: 64, 512>}, {pipeline_mode = #tpu.pipeline_mode<synchronous>, transform_indices = @transform_14, window_bounds = array<i64: 512, 64>}, {pipeline_mode = #tpu.pipeline_mode<synchronous>, transform_indices = @transform_15, window_bounds = array<i64: 1, 64>}, {pipeline_mode = #tpu.pipeline_mode<synchronous>, transform_indices = @transform_16, window_bounds = array<i64: 1, 64>}, {transform_indices = @transform_17, window_bounds = array<i64: 1, 8, 64>}, {transform_indices = @transform_18, window_bounds = array<i64: 1, 8, 64>}]} {
    %c0 = arith.constant 0 : index
    %c0_0 = arith.constant 0 : index
    %c0_1 = arith.constant 0 : index
    %0 = vector.load %arg1[%c0, %c0_0, %c0_1] : memref<1x8x64xf32, #tpu.memory_space<vmem>>, vector<1x8x64xf32>
    %1 = vector.shape_cast %0 : vector<1x8x64xf32> to vector<8x64xf32>
    %c0_2 = arith.constant 0 : index
    %c0_3 = arith.constant 0 : index
    %c0_4 = arith.constant 0 : index
    %2 = vector.load %arg2[%c0_2, %c0_3, %c0_4] : memref<1x8x8xf32, #tpu.memory_space<vmem>>, vector<1x8x8xf32>
    %3 = vector.shape_cast %2 : vector<1x8x8xf32> to vector<8x8xf32>
    %4 = arith.truncf %1 : vector<8x64xf32> to vector<8x64xbf16>
    %c0_5 = arith.constant 0 : index
    %c0_6 = arith.constant 0 : index
    %5 = vector.load %arg5[%c0_5, %c0_6] : memref<64x1536xbf16, #tpu.memory_space<vmem>>, vector<64x1536xbf16>
    %cst = arith.constant dense<0.000000e+00> : vector<8x1536xf32>
    %6 = tpu.matmul %4, %5, %cst {dimension_numbers = #tpu.dot_dimension_numbers<[1], [0], [0], [1], [0, 0, 1, 1], [], []>} : vector<8x64xbf16>, vector<64x1536xbf16>, vector<8x1536xf32> -> vector<8x1536xf32>
    %c0_7 = arith.constant 0 : index
    %c0_8 = arith.constant 0 : index
    %7 = vector.load %arg6[%c0_7, %c0_8] : memref<512x64xbf16, #tpu.memory_space<vmem>>, vector<512x64xbf16>
    %8 = vector.extract_strided_slice %6 {offsets = [0, 0], sizes = [8, 64], strides = [1, 1]} : vector<8x1536xf32> to vector<8x64xf32>
    %9 = vector.extract_strided_slice %6 {offsets = [0, 512], sizes = [8, 64], strides = [1, 1]} : vector<8x1536xf32> to vector<8x64xf32>
    %10 = vector.extract_strided_slice %6 {offsets = [0, 1024], sizes = [8, 64], strides = [1, 1]} : vector<8x1536xf32> to vector<8x64xf32>
    %11 = arith.truncf %8 : vector<8x64xf32> to vector<8x64xbf16>
    %12 = tpu.transpose %9, [1, 0] : vector<8x64xf32> -> vector<64x8xf32>
    %13 = arith.truncf %12 : vector<64x8xf32> to vector<64x8xbf16>
    %cst_9 = arith.constant dense<0.000000e+00> : vector<8x8xf32>
    %14 = tpu.matmul %11, %13, %cst_9 {dimension_numbers = #tpu.dot_dimension_numbers<[1], [0], [0], [1], [0, 0, 1, 1], [], []>} : vector<8x64xbf16>, vector<64x8xbf16>, vector<8x8xf32> -> vector<8x8xf32>
    %cst_10 = arith.constant 1.250000e-01 : f32
    %15 = vector.broadcast %cst_10 : f32 to vector<8x8xf32>
    %16 = arith.mulf %14, %15 : vector<8x8xf32>
    %17 = arith.addf %16, %3 : vector<8x8xf32>
    %cst_11 = arith.constant dense<0xFF800000> : vector<8xf32>
    %18 = vector.multi_reduction <maximumf>, %17, %cst_11 [1] : vector<8x8xf32> to vector<8xf32>
    %19 = vector.shape_cast %18 : vector<8xf32> to vector<8x1xf32>
    %20 = vector.broadcast %19 : vector<8x1xf32> to vector<8x8xf32>
    %21 = arith.subf %17, %20 : vector<8x8xf32>
    %22 = math.exp %21 : vector<8x8xf32>
    %cst_12 = arith.constant dense<0.000000e+00> : vector<8xf32>
    %23 = vector.multi_reduction <add>, %22, %cst_12 [1] : vector<8x8xf32> to vector<8xf32>
    %24 = vector.shape_cast %23 : vector<8xf32> to vector<8x1xf32>
    %25 = tpu.reciprocal %24 {approx = true} : vector<8x1xf32> -> vector<8x1xf32>
    %26 = arith.mulf %24, %25 : vector<8x1xf32>
    %cst_13 = arith.constant 2.000000e+00 : f32
    %27 = vector.broadcast %cst_13 : f32 to vector<8x1xf32>
    %28 = arith.subf %27, %26 : vector<8x1xf32>
    %29 = arith.mulf %25, %28 : vector<8x1xf32>
    %30 = vector.broadcast %29 : vector<8x1xf32> to vector<8x8xf32>
    %31 = arith.mulf %22, %30 : vector<8x8xf32>
    %c0_14 = arith.constant 0 : index
    %c0_15 = arith.constant 0 : index
    %c0_16 = arith.constant 0 : index
    %32 = vector.load %arg19[%c0_14, %c0_15, %c0_16] : memref<1x8x64xf32, #tpu.memory_space<vmem>>, vector<1x8x8xf32>
    %33 = vector.shape_cast %32 : vector<1x8x8xf32> to vector<8x8xf32>
    %34 = vector.shape_cast %31 : vector<8x8xf32> to vector<1x8x8xf32>
    tpu.vector_store %arg19[%c0_14, %c0_15, %c0_16], %34 {strides = array<i32>} : memref<1x8x64xf32, #tpu.memory_space<vmem>>, vector<1x8x8xf32>,
    %35 = arith.truncf %31 : vector<8x8xf32> to vector<8x8xbf16>
    %36 = arith.truncf %10 : vector<8x64xf32> to vector<8x64xbf16>
    %cst_17 = arith.constant dense<0.000000e+00> : vector<8x64xf32>
    %37 = tpu.matmul %35, %36, %cst_17 {dimension_numbers = #tpu.dot_dimension_numbers<[1], [0], [0], [1], [0, 0, 1, 1], [], []>} : vector<8x8xbf16>, vector<8x64xbf16>, vector<8x64xf32> -> vector<8x64xf32>
    %38 = arith.truncf %37 : vector<8x64xf32> to vector<8x64xbf16>
    %39 = vector.extract_strided_slice %7 {offsets = [0, 0], sizes = [64, 64], strides = [1, 1]} : vector<512x64xbf16> to vector<64x64xbf16>
    %cst_18 = arith.constant dense<0.000000e+00> : vector<8x64xf32>
    %40 = tpu.matmul %38, %39, %cst_18 {dimension_numbers = #tpu.dot_dimension_numbers<[1], [0], [0], [1], [0, 0, 1, 1], [], []>} : vector<8x64xbf16>, vector<64x64xbf16>, vector<8x64xf32> -> vector<8x64xf32>
    %41 = arith.addf %1, %40 : vector<8x64xf32>
    %42 = vector.extract_strided_slice %6 {offsets = [0, 64], sizes = [8, 64], strides = [1, 1]} : vector<8x1536xf32> to vector<8x64xf32>
    %43 = vector.extract_strided_slice %6 {offsets = [0, 576], sizes = [8, 64], strides = [1, 1]} : vector<8x1536xf32> to vector<8x64xf32>
    %44 = vector.extract_strided_slice %6 {offsets = [0, 1088], sizes = [8, 64], strides = [1, 1]} : vector<8x1536xf32> to vector<8x64xf32>
    %45 = arith.truncf %42 : vector<8x64xf32> to vector<8x64xbf16>
    %46 = tpu.transpose %43, [1, 0] : vector<8x64xf32> -> vector<64x8xf32>
    %47 = arith.truncf %46 : vector<64x8xf32> to vector<64x8xbf16>
    %cst_19 = arith.constant dense<0.000000e+00> : vector<8x8xf32>
    %48 = tpu.matmul %45, %47, %cst_19 {dimension_numbers = #tpu.dot_dimension_numbers<[1], [0], [0], [1], [0, 0, 1, 1], [], []>} : vector<8x64xbf16>, vector<64x8xbf16>, vector<8x8xf32> -> vector<8x8xf32>
    %cst_20 = arith.constant 1.250000e-01 : f32
    %49 = vector.broadcast %cst_20 : f32 to vector<8x8xf32>
    %50 = arith.mulf %48, %49 : vector<8x8xf32>
    %51 = arith.addf %50, %3 : vector<8x8xf32>
    %cst_21 = arith.constant dense<0xFF800000> : vector<8xf32>
    %52 = vector.multi_reduction <maximumf>, %51, %cst_21 [1] : vector<8x8xf32> to vector<8xf32>
    %53 = vector.shape_cast %52 : vector<8xf32> to vector<8x1xf32>
    %54 = vector.broadcast %53 : vector<8x1xf32> to vector<8x8xf32>
    %55 = arith.subf %51, %54 : vector<8x8xf32>
    %56 = math.exp %55 : vector<8x8xf32>
    %cst_22 = arith.constant dense<0.000000e+00> : vector<8xf32>
    %57 = vector.multi_reduction <add>, %56, %cst_22 [1] : vector<8x8xf32> to vector<8xf32>
    %58 = vector.shape_cast %57 : vector<8xf32> to vector<8x1xf32>
    %59 = tpu.reciprocal %58 {approx = true} : vector<8x1xf32> -> vector<8x1xf32>
    %60 = arith.mulf %58, %59 : vector<8x1xf32>
    %cst_23 = arith.constant 2.000000e+00 : f32
    %61 = vector.broadcast %cst_23 : f32 to vector<8x1xf32>
    %62 = arith.subf %61, %60 : vector<8x1xf32>
    %63 = arith.mulf %59, %62 : vector<8x1xf32>
    %64 = vector.broadcast %63 : vector<8x1xf32> to vector<8x8xf32>
    %65 = arith.mulf %56, %64 : vector<8x8xf32>
    %c0_24 = arith.constant 0 : index
    %c0_25 = arith.constant 0 : index
    %c8 = arith.constant 8 : index
    %66 = vector.load %arg19[%c0_24, %c0_25, %c8] : memref<1x8x64xf32, #tpu.memory_space<vmem>>, vector<1x8x8xf32>
    %67 = vector.shape_cast %66 : vector<1x8x8xf32> to vector<8x8xf32>
    %68 = vector.shape_cast %65 : vector<8x8xf32> to vector<1x8x8xf32>
    tpu.vector_store %arg19[%c0_24, %c0_25, %c8], %68 {strides = array<i32>} : memref<1x8x64xf32, #tpu.memory_space<vmem>>, vector<1x8x8xf32>,
    %69 = arith.truncf %65 : vector<8x8xf32> to vector<8x8xbf16>
    %70 = arith.truncf %44 : vector<8x64xf32> to vector<8x64xbf16>
    %cst_26 = arith.constant dense<0.000000e+00> : vector<8x64xf32>
    %71 = tpu.matmul %69, %70, %cst_26 {dimension_numbers = #tpu.dot_dimension_numbers<[1], [0], [0], [1], [0, 0, 1, 1], [], []>} : vector<8x8xbf16>, vector<8x64xbf16>, vector<8x64xf32> -> vector<8x64xf32>
    %72 = arith.truncf %71 : vector<8x64xf32> to vector<8x64xbf16>
    %73 = vector.extract_strided_slice %7 {offsets = [64, 0], sizes = [64, 64], strides = [1, 1]} : vector<512x64xbf16> to vector<64x64xbf16>
    %cst_27 = arith.constant dense<0.000000e+00> : vector<8x64xf32>
    %74 = tpu.matmul %72, %73, %cst_27 {dimension_numbers = #tpu.dot_dimension_numbers<[1], [0], [0], [1], [0, 0, 1, 1], [], []>} : vector<8x64xbf16>, vector<64x64xbf16>, vector<8x64xf32> -> vector<8x64xf32>
    %75 = arith.addf %41, %74 : vector<8x64xf32>
    %76 = vector.extract_strided_slice %6 {offsets = [0, 128], sizes = [8, 64], strides = [1, 1]} : vector<8x1536xf32> to vector<8x64xf32>
    %77 = vector.extract_strided_slice %6 {offsets = [0, 640], sizes = [8, 64], strides = [1, 1]} : vector<8x1536xf32> to vector<8x64xf32>
    %78 = vector.extract_strided_slice %6 {offsets = [0, 1152], sizes = [8, 64], strides = [1, 1]} : vector<8x1536xf32> to vector<8x64xf32>
    %79 = arith.truncf %76 : vector<8x64xf32> to vector<8x64xbf16>
    %80 = tpu.transpose %77, [1, 0] : vector<8x64xf32> -> vector<64x8xf32>
    %81 = arith.truncf %80 : vector<64x8xf32> to vector<64x8xbf16>
    %cst_28 = arith.constant dense<0.000000e+00> : vector<8x8xf32>
    %82 = tpu.matmul %79, %81, %cst_28 {dimension_numbers = #tpu.dot_dimension_numbers<[1], [0], [0], [1], [0, 0, 1, 1], [], []>} : vector<8x64xbf16>, vector<64x8xbf16>, vector<8x8xf32> -> vector<8x8xf32>
    %cst_29 = arith.constant 1.250000e-01 : f32
    %83 = vector.broadcast %cst_29 : f32 to vector<8x8xf32>
    %84 = arith.mulf %82, %83 : vector<8x8xf32>
    %85 = arith.addf %84, %3 : vector<8x8xf32>
    %cst_30 = arith.constant dense<0xFF800000> : vector<8xf32>
    %86 = vector.multi_reduction <maximumf>, %85, %cst_30 [1] : vector<8x8xf32> to vector<8xf32>
    %87 = vector.shape_cast %86 : vector<8xf32> to vector<8x1xf32>
    %88 = vector.broadcast %87 : vector<8x1xf32> to vector<8x8xf32>
    %89 = arith.subf %85, %88 : vector<8x8xf32>
    %90 = math.exp %89 : vector<8x8xf32>
    %cst_31 = arith.constant dense<0.000000e+00> : vector<8xf32>
    %91 = vector.multi_reduction <add>, %90, %cst_31 [1] : vector<8x8xf32> to vector<8xf32>
    %92 = vector.shape_cast %91 : vector<8xf32> to vector<8x1xf32>
    %93 = tpu.reciprocal %92 {approx = true} : vector<8x1xf32> -> vector<8x1xf32>
    %94 = arith.mulf %92, %93 : vector<8x1xf32>
    %cst_32 = arith.constant 2.000000e+00 : f32
    %95 = vector.broadcast %cst_32 : f32 to vector<8x1xf32>
    %96 = arith.subf %95, %94 : vector<8x1xf32>
    %97 = arith.mulf %93, %96 : vector<8x1xf32>
    %98 = vector.broadcast %97 : vector<8x1xf32> to vector<8x8xf32>
    %99 = arith.mulf %90, %98 : vector<8x8xf32>
    %c0_33 = arith.constant 0 : index
    %c0_34 = arith.constant 0 : index
    %c16 = arith.constant 16 : index
    %100 = vector.load %arg19[%c0_33, %c0_34, %c16] : memref<1x8x64xf32, #tpu.memory_space<vmem>>, vector<1x8x8xf32>
    %101 = vector.shape_cast %100 : vector<1x8x8xf32> to vector<8x8xf32>
    %102 = vector.shape_cast %99 : vector<8x8xf32> to vector<1x8x8xf32>
    tpu.vector_store %arg19[%c0_33, %c0_34, %c16], %102 {strides = array<i32>} : memref<1x8x64xf32, #tpu.memory_space<vmem>>, vector<1x8x8xf32>,
    %103 = arith.truncf %99 : vector<8x8xf32> to vector<8x8xbf16>
    %104 = arith.truncf %78 : vector<8x64xf32> to vector<8x64xbf16>
    %cst_35 = arith.constant dense<0.000000e+00> : vector<8x64xf32>
    %105 = tpu.matmul %103, %104, %cst_35 {dimension_numbers = #tpu.dot_dimension_numbers<[1], [0], [0], [1], [0, 0, 1, 1], [], []>} : vector<8x8xbf16>, vector<8x64xbf16>, vector<8x64xf32> -> vector<8x64xf32>
    %106 = arith.truncf %105 : vector<8x64xf32> to vector<8x64xbf16>
    %107 = vector.extract_strided_slice %7 {offsets = [128, 0], sizes = [64, 64], strides = [1, 1]} : vector<512x64xbf16> to vector<64x64xbf16>
    %cst_36 = arith.constant dense<0.000000e+00> : vector<8x64xf32>
    %108 = tpu.matmul %106, %107, %cst_36 {dimension_numbers = #tpu.dot_dimension_numbers<[1], [0], [0], [1], [0, 0, 1, 1], [], []>} : vector<8x64xbf16>, vector<64x64xbf16>, vector<8x64xf32> -> vector<8x64xf32>
    %109 = arith.addf %75, %108 : vector<8x64xf32>
    %110 = vector.extract_strided_slice %6 {offsets = [0, 192], sizes = [8, 64], strides = [1, 1]} : vector<8x1536xf32> to vector<8x64xf32>
    %111 = vector.extract_strided_slice %6 {offsets = [0, 704], sizes = [8, 64], strides = [1, 1]} : vector<8x1536xf32> to vector<8x64xf32>
    %112 = vector.extract_strided_slice %6 {offsets = [0, 1216], sizes = [8, 64], strides = [1, 1]} : vector<8x1536xf32> to vector<8x64xf32>
    %113 = arith.truncf %110 : vector<8x64xf32> to vector<8x64xbf16>
    %114 = tpu.transpose %111, [1, 0] : vector<8x64xf32> -> vector<64x8xf32>
    %115 = arith.truncf %114 : vector<64x8xf32> to vector<64x8xbf16>
    %cst_37 = arith.constant dense<0.000000e+00> : vector<8x8xf32>
    %116 = tpu.matmul %113, %115, %cst_37 {dimension_numbers = #tpu.dot_dimension_numbers<[1], [0], [0], [1], [0, 0, 1, 1], [], []>} : vector<8x64xbf16>, vector<64x8xbf16>, vector<8x8xf32> -> vector<8x8xf32>
    %cst_38 = arith.constant 1.250000e-01 : f32
    %117 = vector.broadcast %cst_38 : f32 to vector<8x8xf32>
    %118 = arith.mulf %116, %117 : vector<8x8xf32>
    %119 = arith.addf %118, %3 : vector<8x8xf32>
    %cst_39 = arith.constant dense<0xFF800000> : vector<8xf32>
    %120 = vector.multi_reduction <maximumf>, %119, %cst_39 [1] : vector<8x8xf32> to vector<8xf32>
    %121 = vector.shape_cast %120 : vector<8xf32> to vector<8x1xf32>
    %122 = vector.broadcast %121 : vector<8x1xf32> to vector<8x8xf32>
    %123 = arith.subf %119, %122 : vector<8x8xf32>
    %124 = math.exp %123 : vector<8x8xf32>
    %cst_40 = arith.constant dense<0.000000e+00> : vector<8xf32>
    %125 = vector.multi_reduction <add>, %124, %cst_40 [1] : vector<8x8xf32> to vector<8xf32>
    %126 = vector.shape_cast %125 : vector<8xf32> to vector<8x1xf32>
    %127 = tpu.reciprocal %126 {approx = true} : vector<8x1xf32> -> vector<8x1xf32>
    %128 = arith.mulf %126, %127 : vector<8x1xf32>
    %cst_41 = arith.constant 2.000000e+00 : f32
    %129 = vector.broadcast %cst_41 : f32 to vector<8x1xf32>
    %130 = arith.subf %129, %128 : vector<8x1xf32>
    %131 = arith.mulf %127, %130 : vector<8x1xf32>
    %132 = vector.broadcast %131 : vector<8x1xf32> to vector<8x8xf32>
    %133 = arith.mulf %124, %132 : vector<8x8xf32>
    %c0_42 = arith.constant 0 : index
    %c0_43 = arith.constant 0 : index
    %c24 = arith.constant 24 : index
    %134 = vector.load %arg19[%c0_42, %c0_43, %c24] : memref<1x8x64xf32, #tpu.memory_space<vmem>>, vector<1x8x8xf32>
    %135 = vector.shape_cast %134 : vector<1x8x8xf32> to vector<8x8xf32>
    %136 = vector.shape_cast %133 : vector<8x8xf32> to vector<1x8x8xf32>
    tpu.vector_store %arg19[%c0_42, %c0_43, %c24], %136 {strides = array<i32>} : memref<1x8x64xf32, #tpu.memory_space<vmem>>, vector<1x8x8xf32>,
    %137 = arith.truncf %133 : vector<8x8xf32> to vector<8x8xbf16>
    %138 = arith.truncf %112 : vector<8x64xf32> to vector<8x64xbf16>
    %cst_44 = arith.constant dense<0.000000e+00> : vector<8x64xf32>
    %139 = tpu.matmul %137, %138, %cst_44 {dimension_numbers = #tpu.dot_dimension_numbers<[1], [0], [0], [1], [0, 0, 1, 1], [], []>} : vector<8x8xbf16>, vector<8x64xbf16>, vector<8x64xf32> -> vector<8x64xf32>
    %140 = arith.truncf %139 : vector<8x64xf32> to vector<8x64xbf16>
    %141 = vector.extract_strided_slice %7 {offsets = [192, 0], sizes = [64, 64], strides = [1, 1]} : vector<512x64xbf16> to vector<64x64xbf16>
    %cst_45 = arith.constant dense<0.000000e+00> : vector<8x64xf32>
    %142 = tpu.matmul %140, %141, %cst_45 {dimension_numbers = #tpu.dot_dimension_numbers<[1], [0], [0], [1], [0, 0, 1, 1], [], []>} : vector<8x64xbf16>, vector<64x64xbf16>, vector<8x64xf32> -> vector<8x64xf32>
    %143 = arith.addf %109, %142 : vector<8x64xf32>
    %144 = vector.extract_strided_slice %6 {offsets = [0, 256], sizes = [8, 64], strides = [1, 1]} : vector<8x1536xf32> to vector<8x64xf32>
    %145 = vector.extract_strided_slice %6 {offsets = [0, 768], sizes = [8, 64], strides = [1, 1]} : vector<8x1536xf32> to vector<8x64xf32>
    %146 = vector.extract_strided_slice %6 {offsets = [0, 1280], sizes = [8, 64], strides = [1, 1]} : vector<8x1536xf32> to vector<8x64xf32>
    %147 = arith.truncf %144 : vector<8x64xf32> to vector<8x64xbf16>
    %148 = tpu.transpose %145, [1, 0] : vector<8x64xf32> -> vector<64x8xf32>
    %149 = arith.truncf %148 : vector<64x8xf32> to vector<64x8xbf16>
    %cst_46 = arith.constant dense<0.000000e+00> : vector<8x8xf32>
    %150 = tpu.matmul %147, %149, %cst_46 {dimension_numbers = #tpu.dot_dimension_numbers<[1], [0], [0], [1], [0, 0, 1, 1], [], []>} : vector<8x64xbf16>, vector<64x8xbf16>, vector<8x8xf32> -> vector<8x8xf32>
    %cst_47 = arith.constant 1.250000e-01 : f32
    %151 = vector.broadcast %cst_47 : f32 to vector<8x8xf32>
    %152 = arith.mulf %150, %151 : vector<8x8xf32>
    %153 = arith.addf %152, %3 : vector<8x8xf32>
    %cst_48 = arith.constant dense<0xFF800000> : vector<8xf32>
    %154 = vector.multi_reduction <maximumf>, %153, %cst_48 [1] : vector<8x8xf32> to vector<8xf32>
    %155 = vector.shape_cast %154 : vector<8xf32> to vector<8x1xf32>
    %156 = vector.broadcast %155 : vector<8x1xf32> to vector<8x8xf32>
    %157 = arith.subf %153, %156 : vector<8x8xf32>
    %158 = math.exp %157 : vector<8x8xf32>
    %cst_49 = arith.constant dense<0.000000e+00> : vector<8xf32>
    %159 = vector.multi_reduction <add>, %158, %cst_49 [1] : vector<8x8xf32> to vector<8xf32>
    %160 = vector.shape_cast %159 : vector<8xf32> to vector<8x1xf32>
    %161 = tpu.reciprocal %160 {approx = true} : vector<8x1xf32> -> vector<8x1xf32>
    %162 = arith.mulf %160, %161 : vector<8x1xf32>
    %cst_50 = arith.constant 2.000000e+00 : f32
    %163 = vector.broadcast %cst_50 : f32 to vector<8x1xf32>
    %164 = arith.subf %163, %162 : vector<8x1xf32>
    %165 = arith.mulf %161, %164 : vector<8x1xf32>
    %166 = vector.broadcast %165 : vector<8x1xf32> to vector<8x8xf32>
    %167 = arith.mulf %158, %166 : vector<8x8xf32>
    %c0_51 = arith.constant 0 : index
    %c0_52 = arith.constant 0 : index
    %c32 = arith.constant 32 : index
    %168 = vector.load %arg19[%c0_51, %c0_52, %c32] : memref<1x8x64xf32, #tpu.memory_space<vmem>>, vector<1x8x8xf32>
    %169 = vector.shape_cast %168 : vector<1x8x8xf32> to vector<8x8xf32>
    %170 = vector.shape_cast %167 : vector<8x8xf32> to vector<1x8x8xf32>
    tpu.vector_store %arg19[%c0_51, %c0_52, %c32], %170 {strides = array<i32>} : memref<1x8x64xf32, #tpu.memory_space<vmem>>, vector<1x8x8xf32>,
    %171 = arith.truncf %167 : vector<8x8xf32> to vector<8x8xbf16>
    %172 = arith.truncf %146 : vector<8x64xf32> to vector<8x64xbf16>
    %cst_53 = arith.constant dense<0.000000e+00> : vector<8x64xf32>
    %173 = tpu.matmul %171, %172, %cst_53 {dimension_numbers = #tpu.dot_dimension_numbers<[1], [0], [0], [1], [0, 0, 1, 1], [], []>} : vector<8x8xbf16>, vector<8x64xbf16>, vector<8x64xf32> -> vector<8x64xf32>
    %174 = arith.truncf %173 : vector<8x64xf32> to vector<8x64xbf16>
    %175 = vector.extract_strided_slice %7 {offsets = [256, 0], sizes = [64, 64], strides = [1, 1]} : vector<512x64xbf16> to vector<64x64xbf16>
    %cst_54 = arith.constant dense<0.000000e+00> : vector<8x64xf32>
    %176 = tpu.matmul %174, %175, %cst_54 {dimension_numbers = #tpu.dot_dimension_numbers<[1], [0], [0], [1], [0, 0, 1, 1], [], []>} : vector<8x64xbf16>, vector<64x64xbf16>, vector<8x64xf32> -> vector<8x64xf32>
    %177 = arith.addf %143, %176 : vector<8x64xf32>
    %178 = vector.extract_strided_slice %6 {offsets = [0, 320], sizes = [8, 64], strides = [1, 1]} : vector<8x1536xf32> to vector<8x64xf32>
    %179 = vector.extract_strided_slice %6 {offsets = [0, 832], sizes = [8, 64], strides = [1, 1]} : vector<8x1536xf32> to vector<8x64xf32>
    %180 = vector.extract_strided_slice %6 {offsets = [0, 1344], sizes = [8, 64], strides = [1, 1]} : vector<8x1536xf32> to vector<8x64xf32>
    %181 = arith.truncf %178 : vector<8x64xf32> to vector<8x64xbf16>
    %182 = tpu.transpose %179, [1, 0] : vector<8x64xf32> -> vector<64x8xf32>
    %183 = arith.truncf %182 : vector<64x8xf32> to vector<64x8xbf16>
    %cst_55 = arith.constant dense<0.000000e+00> : vector<8x8xf32>
    %184 = tpu.matmul %181, %183, %cst_55 {dimension_numbers = #tpu.dot_dimension_numbers<[1], [0], [0], [1], [0, 0, 1, 1], [], []>} : vector<8x64xbf16>, vector<64x8xbf16>, vector<8x8xf32> -> vector<8x8xf32>
    %cst_56 = arith.constant 1.250000e-01 : f32
    %185 = vector.broadcast %cst_56 : f32 to vector<8x8xf32>
    %186 = arith.mulf %184, %185 : vector<8x8xf32>
    %187 = arith.addf %186, %3 : vector<8x8xf32>
    %cst_57 = arith.constant dense<0xFF800000> : vector<8xf32>
    %188 = vector.multi_reduction <maximumf>, %187, %cst_57 [1] : vector<8x8xf32> to vector<8xf32>
    %189 = vector.shape_cast %188 : vector<8xf32> to vector<8x1xf32>
    %190 = vector.broadcast %189 : vector<8x1xf32> to vector<8x8xf32>
    %191 = arith.subf %187, %190 : vector<8x8xf32>
    %192 = math.exp %191 : vector<8x8xf32>
    %cst_58 = arith.constant dense<0.000000e+00> : vector<8xf32>
    %193 = vector.multi_reduction <add>, %192, %cst_58 [1] : vector<8x8xf32> to vector<8xf32>
    %194 = vector.shape_cast %193 : vector<8xf32> to vector<8x1xf32>
    %195 = tpu.reciprocal %194 {approx = true} : vector<8x1xf32> -> vector<8x1xf32>
    %196 = arith.mulf %194, %195 : vector<8x1xf32>
    %cst_59 = arith.constant 2.000000e+00 : f32
    %197 = vector.broadcast %cst_59 : f32 to vector<8x1xf32>
    %198 = arith.subf %197, %196 : vector<8x1xf32>
    %199 = arith.mulf %195, %198 : vector<8x1xf32>
    %200 = vector.broadcast %199 : vector<8x1xf32> to vector<8x8xf32>
    %201 = arith.mulf %192, %200 : vector<8x8xf32>
    %c0_60 = arith.constant 0 : index
    %c0_61 = arith.constant 0 : index
    %c40 = arith.constant 40 : index
    %202 = vector.load %arg19[%c0_60, %c0_61, %c40] : memref<1x8x64xf32, #tpu.memory_space<vmem>>, vector<1x8x8xf32>
    %203 = vector.shape_cast %202 : vector<1x8x8xf32> to vector<8x8xf32>
    %204 = vector.shape_cast %201 : vector<8x8xf32> to vector<1x8x8xf32>
    tpu.vector_store %arg19[%c0_60, %c0_61, %c40], %204 {strides = array<i32>} : memref<1x8x64xf32, #tpu.memory_space<vmem>>, vector<1x8x8xf32>,
    %205 = arith.truncf %201 : vector<8x8xf32> to vector<8x8xbf16>
    %206 = arith.truncf %180 : vector<8x64xf32> to vector<8x64xbf16>
    %cst_62 = arith.constant dense<0.000000e+00> : vector<8x64xf32>
    %207 = tpu.matmul %205, %206, %cst_62 {dimension_numbers = #tpu.dot_dimension_numbers<[1], [0], [0], [1], [0, 0, 1, 1], [], []>} : vector<8x8xbf16>, vector<8x64xbf16>, vector<8x64xf32> -> vector<8x64xf32>
    %208 = arith.truncf %207 : vector<8x64xf32> to vector<8x64xbf16>
    %209 = vector.extract_strided_slice %7 {offsets = [320, 0], sizes = [64, 64], strides = [1, 1]} : vector<512x64xbf16> to vector<64x64xbf16>
    %cst_63 = arith.constant dense<0.000000e+00> : vector<8x64xf32>
    %210 = tpu.matmul %208, %209, %cst_63 {dimension_numbers = #tpu.dot_dimension_numbers<[1], [0], [0], [1], [0, 0, 1, 1], [], []>} : vector<8x64xbf16>, vector<64x64xbf16>, vector<8x64xf32> -> vector<8x64xf32>
    %211 = arith.addf %177, %210 : vector<8x64xf32>
    %212 = vector.extract_strided_slice %6 {offsets = [0, 384], sizes = [8, 64], strides = [1, 1]} : vector<8x1536xf32> to vector<8x64xf32>
    %213 = vector.extract_strided_slice %6 {offsets = [0, 896], sizes = [8, 64], strides = [1, 1]} : vector<8x1536xf32> to vector<8x64xf32>
    %214 = vector.extract_strided_slice %6 {offsets = [0, 1408], sizes = [8, 64], strides = [1, 1]} : vector<8x1536xf32> to vector<8x64xf32>
    %215 = arith.truncf %212 : vector<8x64xf32> to vector<8x64xbf16>
    %216 = tpu.transpose %213, [1, 0] : vector<8x64xf32> -> vector<64x8xf32>
    %217 = arith.truncf %216 : vector<64x8xf32> to vector<64x8xbf16>
    %cst_64 = arith.constant dense<0.000000e+00> : vector<8x8xf32>
    %218 = tpu.matmul %215, %217, %cst_64 {dimension_numbers = #tpu.dot_dimension_numbers<[1], [0], [0], [1], [0, 0, 1, 1], [], []>} : vector<8x64xbf16>, vector<64x8xbf16>, vector<8x8xf32> -> vector<8x8xf32>
    %cst_65 = arith.constant 1.250000e-01 : f32
    %219 = vector.broadcast %cst_65 : f32 to vector<8x8xf32>
    %220 = arith.mulf %218, %219 : vector<8x8xf32>
    %221 = arith.addf %220, %3 : vector<8x8xf32>
    %cst_66 = arith.constant dense<0xFF800000> : vector<8xf32>
    %222 = vector.multi_reduction <maximumf>, %221, %cst_66 [1] : vector<8x8xf32> to vector<8xf32>
    %223 = vector.shape_cast %222 : vector<8xf32> to vector<8x1xf32>
    %224 = vector.broadcast %223 : vector<8x1xf32> to vector<8x8xf32>
    %225 = arith.subf %221, %224 : vector<8x8xf32>
    %226 = math.exp %225 : vector<8x8xf32>
    %cst_67 = arith.constant dense<0.000000e+00> : vector<8xf32>
    %227 = vector.multi_reduction <add>, %226, %cst_67 [1] : vector<8x8xf32> to vector<8xf32>
    %228 = vector.shape_cast %227 : vector<8xf32> to vector<8x1xf32>
    %229 = tpu.reciprocal %228 {approx = true} : vector<8x1xf32> -> vector<8x1xf32>
    %230 = arith.mulf %228, %229 : vector<8x1xf32>
    %cst_68 = arith.constant 2.000000e+00 : f32
    %231 = vector.broadcast %cst_68 : f32 to vector<8x1xf32>
    %232 = arith.subf %231, %230 : vector<8x1xf32>
    %233 = arith.mulf %229, %232 : vector<8x1xf32>
    %234 = vector.broadcast %233 : vector<8x1xf32> to vector<8x8xf32>
    %235 = arith.mulf %226, %234 : vector<8x8xf32>
    %c0_69 = arith.constant 0 : index
    %c0_70 = arith.constant 0 : index
    %c48 = arith.constant 48 : index
    %236 = vector.load %arg19[%c0_69, %c0_70, %c48] : memref<1x8x64xf32, #tpu.memory_space<vmem>>, vector<1x8x8xf32>
    %237 = vector.shape_cast %236 : vector<1x8x8xf32> to vector<8x8xf32>
    %238 = vector.shape_cast %235 : vector<8x8xf32> to vector<1x8x8xf32>
    tpu.vector_store %arg19[%c0_69, %c0_70, %c48], %238 {strides = array<i32>} : memref<1x8x64xf32, #tpu.memory_space<vmem>>, vector<1x8x8xf32>,
    %239 = arith.truncf %235 : vector<8x8xf32> to vector<8x8xbf16>
    %240 = arith.truncf %214 : vector<8x64xf32> to vector<8x64xbf16>
    %cst_71 = arith.constant dense<0.000000e+00> : vector<8x64xf32>
    %241 = tpu.matmul %239, %240, %cst_71 {dimension_numbers = #tpu.dot_dimension_numbers<[1], [0], [0], [1], [0, 0, 1, 1], [], []>} : vector<8x8xbf16>, vector<8x64xbf16>, vector<8x64xf32> -> vector<8x64xf32>
    %242 = arith.truncf %241 : vector<8x64xf32> to vector<8x64xbf16>
    %243 = vector.extract_strided_slice %7 {offsets = [384, 0], sizes = [64, 64], strides = [1, 1]} : vector<512x64xbf16> to vector<64x64xbf16>
    %cst_72 = arith.constant dense<0.000000e+00> : vector<8x64xf32>
    %244 = tpu.matmul %242, %243, %cst_72 {dimension_numbers = #tpu.dot_dimension_numbers<[1], [0], [0], [1], [0, 0, 1, 1], [], []>} : vector<8x64xbf16>, vector<64x64xbf16>, vector<8x64xf32> -> vector<8x64xf32>
    %245 = arith.addf %211, %244 : vector<8x64xf32>
    %246 = vector.extract_strided_slice %6 {offsets = [0, 448], sizes = [8, 64], strides = [1, 1]} : vector<8x1536xf32> to vector<8x64xf32>
    %247 = vector.extract_strided_slice %6 {offsets = [0, 960], sizes = [8, 64], strides = [1, 1]} : vector<8x1536xf32> to vector<8x64xf32>
    %248 = vector.extract_strided_slice %6 {offsets = [0, 1472], sizes = [8, 64], strides = [1, 1]} : vector<8x1536xf32> to vector<8x64xf32>
    %249 = arith.truncf %246 : vector<8x64xf32> to vector<8x64xbf16>
    %250 = tpu.transpose %247, [1, 0] : vector<8x64xf32> -> vector<64x8xf32>
    %251 = arith.truncf %250 : vector<64x8xf32> to vector<64x8xbf16>
    %cst_73 = arith.constant dense<0.000000e+00> : vector<8x8xf32>
    %252 = tpu.matmul %249, %251, %cst_73 {dimension_numbers = #tpu.dot_dimension_numbers<[1], [0], [0], [1], [0, 0, 1, 1], [], []>} : vector<8x64xbf16>, vector<64x8xbf16>, vector<8x8xf32> -> vector<8x8xf32>
    %cst_74 = arith.constant 1.250000e-01 : f32
    %253 = vector.broadcast %cst_74 : f32 to vector<8x8xf32>
    %254 = arith.mulf %252, %253 : vector<8x8xf32>
    %255 = arith.addf %254, %3 : vector<8x8xf32>
    %cst_75 = arith.constant dense<0xFF800000> : vector<8xf32>
    %256 = vector.multi_reduction <maximumf>, %255, %cst_75 [1] : vector<8x8xf32> to vector<8xf32>
    %257 = vector.shape_cast %256 : vector<8xf32> to vector<8x1xf32>
    %258 = vector.broadcast %257 : vector<8x1xf32> to vector<8x8xf32>
    %259 = arith.subf %255, %258 : vector<8x8xf32>
    %260 = math.exp %259 : vector<8x8xf32>
    %cst_76 = arith.constant dense<0.000000e+00> : vector<8xf32>
    %261 = vector.multi_reduction <add>, %260, %cst_76 [1] : vector<8x8xf32> to vector<8xf32>
    %262 = vector.shape_cast %261 : vector<8xf32> to vector<8x1xf32>
    %263 = tpu.reciprocal %262 {approx = true} : vector<8x1xf32> -> vector<8x1xf32>
    %264 = arith.mulf %262, %263 : vector<8x1xf32>
    %cst_77 = arith.constant 2.000000e+00 : f32
    %265 = vector.broadcast %cst_77 : f32 to vector<8x1xf32>
    %266 = arith.subf %265, %264 : vector<8x1xf32>
    %267 = arith.mulf %263, %266 : vector<8x1xf32>
    %268 = vector.broadcast %267 : vector<8x1xf32> to vector<8x8xf32>
    %269 = arith.mulf %260, %268 : vector<8x8xf32>
    %c0_78 = arith.constant 0 : index
    %c0_79 = arith.constant 0 : index
    %c56 = arith.constant 56 : index
    %270 = vector.load %arg19[%c0_78, %c0_79, %c56] : memref<1x8x64xf32, #tpu.memory_space<vmem>>, vector<1x8x8xf32>
    %271 = vector.shape_cast %270 : vector<1x8x8xf32> to vector<8x8xf32>
    %272 = vector.shape_cast %269 : vector<8x8xf32> to vector<1x8x8xf32>
    tpu.vector_store %arg19[%c0_78, %c0_79, %c56], %272 {strides = array<i32>} : memref<1x8x64xf32, #tpu.memory_space<vmem>>, vector<1x8x8xf32>,
    %273 = arith.truncf %269 : vector<8x8xf32> to vector<8x8xbf16>
    %274 = arith.truncf %248 : vector<8x64xf32> to vector<8x64xbf16>
    %cst_80 = arith.constant dense<0.000000e+00> : vector<8x64xf32>
    %275 = tpu.matmul %273, %274, %cst_80 {dimension_numbers = #tpu.dot_dimension_numbers<[1], [0], [0], [1], [0, 0, 1, 1], [], []>} : vector<8x8xbf16>, vector<8x64xbf16>, vector<8x64xf32> -> vector<8x64xf32>
    %276 = arith.truncf %275 : vector<8x64xf32> to vector<8x64xbf16>
    %277 = vector.extract_strided_slice %7 {offsets = [448, 0], sizes = [64, 64], strides = [1, 1]} : vector<512x64xbf16> to vector<64x64xbf16>
    %cst_81 = arith.constant dense<0.000000e+00> : vector<8x64xf32>
    %278 = tpu.matmul %276, %277, %cst_81 {dimension_numbers = #tpu.dot_dimension_numbers<[1], [0], [0], [1], [0, 0, 1, 1], [], []>} : vector<8x64xbf16>, vector<64x64xbf16>, vector<8x64xf32> -> vector<8x64xf32>
    %279 = arith.addf %245, %278 : vector<8x64xf32>
    %cst_82 = arith.constant dense<0.000000e+00> : vector<8xf32>
    %280 = vector.multi_reduction <add>, %279, %cst_82 [1] : vector<8x64xf32> to vector<8xf32>
    %281 = vector.shape_cast %280 : vector<8xf32> to vector<8x1xf32>
    %cst_83 = arith.constant 6.400000e+01 : f32
    %282 = vector.broadcast %cst_83 : f32 to vector<8x1xf32>
    %283 = arith.divf %281, %282 : vector<8x1xf32>
    %284 = vector.broadcast %283 : vector<8x1xf32> to vector<8x64xf32>
    %285 = arith.subf %279, %284 : vector<8x64xf32>
    %286 = arith.mulf %285, %285 : vector<8x64xf32>
    %cst_84 = arith.constant dense<0.000000e+00> : vector<8xf32>
    %287 = vector.multi_reduction <add>, %286, %cst_84 [1] : vector<8x64xf32> to vector<8xf32>
    %288 = vector.shape_cast %287 : vector<8xf32> to vector<8x1xf32>
    %cst_85 = arith.constant 6.400000e+01 : f32
    %289 = vector.broadcast %cst_85 : f32 to vector<8x1xf32>
    %290 = arith.divf %288, %289 : vector<8x1xf32>
    %291 = vector.broadcast %283 : vector<8x1xf32> to vector<8x64xf32>
    %292 = arith.subf %279, %291 : vector<8x64xf32>
    %cst_86 = arith.constant 9.99999974E-6 : f32
    %293 = vector.broadcast %cst_86 : f32 to vector<8x1xf32>
    %294 = arith.addf %290, %293 : vector<8x1xf32>
    %295 = math.rsqrt %294 : vector<8x1xf32>
    %296 = vector.broadcast %295 : vector<8x1xf32> to vector<8x64xf32>
    %297 = arith.mulf %292, %296 : vector<8x64xf32>
    %c0_87 = arith.constant 0 : index
    %c0_88 = arith.constant 0 : index
    %298 = vector.load %arg7[%c0_87, %c0_88] : memref<1x64xf32, #tpu.memory_space<vmem>>, vector<1x64xf32>
    %299 = vector.broadcast %298 : vector<1x64xf32> to vector<8x64xf32>
    %300 = arith.mulf %297, %299 : vector<8x64xf32>
    %c0_89 = arith.constant 0 : index
    %c0_90 = arith.constant 0 : index
    %301 = vector.load %arg8[%c0_89, %c0_90] : memref<1x64xf32, #tpu.memory_space<vmem>>, vector<1x64xf32>
    %302 = vector.broadcast %301 : vector<1x64xf32> to vector<8x64xf32>
    %303 = arith.addf %300, %302 : vector<8x64xf32>
    %c0_91 = arith.constant 0 : index
    %c0_92 = arith.constant 0 : index
    %304 = vector.load %arg13[%c0_91, %c0_92] : memref<8x64xf32, #tpu.memory_space<vmem>>, vector<8x64xf32>
    %305 = vector.extract_strided_slice %304 {offsets = [0, 0], sizes = [1, 64], strides = [1, 1]} : vector<8x64xf32> to vector<1x64xf32>
    %306 = vector.broadcast %305 : vector<1x64xf32> to vector<8x64xf32>
    %307 = arith.mulf %303, %306 : vector<8x64xf32>
    %308 = vector.extract_strided_slice %304 {offsets = [2, 0], sizes = [1, 64], strides = [1, 1]} : vector<8x64xf32> to vector<1x64xf32>
    %309 = vector.broadcast %308 : vector<1x64xf32> to vector<8x64xf32>
    %310 = arith.addf %307, %309 : vector<8x64xf32>
    %311 = vector.extract_strided_slice %304 {offsets = [1, 0], sizes = [1, 64], strides = [1, 1]} : vector<8x64xf32> to vector<1x64xf32>
    %312 = vector.broadcast %311 : vector<1x64xf32> to vector<8x64xf32>
    %313 = arith.mulf %303, %312 : vector<8x64xf32>
    %314 = vector.extract_strided_slice %304 {offsets = [3, 0], sizes = [1, 64], strides = [1, 1]} : vector<8x64xf32> to vector<1x64xf32>
    %315 = vector.broadcast %314 : vector<1x64xf32> to vector<8x64xf32>
    %316 = arith.addf %313, %315 : vector<8x64xf32>
    %cst_93 = arith.constant 0.000000e+00 : f32
    %317 = vector.broadcast %cst_93 : f32 to vector<8x64xf32>
    %318 = arith.subf %317, %316 : vector<8x64xf32>
    %319 = math.exp %318 : vector<8x64xf32>
    %cst_94 = arith.constant 1.000000e+00 : f32
    %320 = vector.broadcast %cst_94 : f32 to vector<8x64xf32>
    %321 = arith.addf %320, %319 : vector<8x64xf32>
    %cst_95 = arith.constant 1.000000e+00 : f32
    %322 = vector.broadcast %cst_95 : f32 to vector<8x64xf32>
    %323 = arith.divf %322, %321 : vector<8x64xf32>
    %324 = arith.mulf %310, %323 : vector<8x64xf32>
    %c1_i32 = arith.constant 1 : i32
    %325 = tpu.dynamic_rotate %324 by %c1_i32 dim 0 : vector<8x64xf32>, i32 -> vector<8x64xf32>
    %c0_96 = arith.constant 0 : index
    %c0_97 = arith.constant 0 : index
    %326 = vector.load %arg3[%c0_96, %c0_97] : memref<8x1xf32, #tpu.memory_space<vmem>>, vector<8x1xf32>
    %327 = vector.broadcast %326 : vector<8x1xf32> to vector<8x64xf32>
    %328 = arith.mulf %325, %327 : vector<8x64xf32>
    %c7_i32 = arith.constant 7 : i32
    %329 = tpu.dynamic_rotate %324 by %c7_i32 dim 0 : vector<8x64xf32>, i32 -> vector<8x64xf32>
    %c0_98 = arith.constant 0 : index
    %c0_99 = arith.constant 0 : index
    %330 = vector.load %arg4[%c0_98, %c0_99] : memref<8x1xf32, #tpu.memory_space<vmem>>, vector<8x1xf32>
    %331 = vector.broadcast %330 : vector<8x1xf32> to vector<8x64xf32>
    %332 = arith.mulf %329, %331 : vector<8x64xf32>
    %c0_100 = arith.constant 0 : index
    %c0_101 = arith.constant 0 : index
    %333 = vector.load %arg9[%c0_100, %c0_101] : memref<3x64xf32, #tpu.memory_space<vmem>>, vector<3x64xf32>
    %334 = vector.extract_strided_slice %333 {offsets = [0, 0], sizes = [1, 64], strides = [1, 1]} : vector<3x64xf32> to vector<1x64xf32>
    %335 = vector.broadcast %334 : vector<1x64xf32> to vector<8x64xf32>
    %336 = arith.mulf %328, %335 : vector<8x64xf32>
    %337 = vector.extract_strided_slice %333 {offsets = [1, 0], sizes = [1, 64], strides = [1, 1]} : vector<3x64xf32> to vector<1x64xf32>
    %338 = vector.broadcast %337 : vector<1x64xf32> to vector<8x64xf32>
    %339 = arith.mulf %324, %338 : vector<8x64xf32>
    %340 = arith.addf %336, %339 : vector<8x64xf32>
    %341 = vector.extract_strided_slice %333 {offsets = [2, 0], sizes = [1, 64], strides = [1, 1]} : vector<3x64xf32> to vector<1x64xf32>
    %342 = vector.broadcast %341 : vector<1x64xf32> to vector<8x64xf32>
    %343 = arith.mulf %332, %342 : vector<8x64xf32>
    %344 = arith.addf %340, %343 : vector<8x64xf32>
    %c0_102 = arith.constant 0 : index
    %c0_103 = arith.constant 0 : index
    %345 = vector.load %arg10[%c0_102, %c0_103] : memref<1x64xf32, #tpu.memory_space<vmem>>, vector<1x64xf32>
    %346 = vector.broadcast %345 : vector<1x64xf32> to vector<8x64xf32>
    %347 = arith.addf %344, %346 : vector<8x64xf32>
    %c0_104 = arith.constant 0 : index
    %c0_105 = arith.constant 0 : index
    %348 = vector.load %arg11[%c0_104, %c0_105] : memref<1x64xf32, #tpu.memory_space<vmem>>, vector<1x64xf32>
    %349 = vector.broadcast %348 : vector<1x64xf32> to vector<8x64xf32>
    %350 = arith.mulf %347, %349 : vector<8x64xf32>
    %c0_106 = arith.constant 0 : index
    %c0_107 = arith.constant 0 : index
    %351 = vector.load %arg12[%c0_106, %c0_107] : memref<1x64xf32, #tpu.memory_space<vmem>>, vector<1x64xf32>
    %352 = vector.broadcast %351 : vector<1x64xf32> to vector<8x64xf32>
    %353 = arith.addf %350, %352 : vector<8x64xf32>
    %cst_108 = arith.constant 0.000000e+00 : f32
    %354 = vector.broadcast %cst_108 : f32 to vector<8x64xf32>
    %355 = arith.maximumf %353, %354 : vector<8x64xf32>
    %356 = vector.extract_strided_slice %304 {offsets = [4, 0], sizes = [1, 64], strides = [1, 1]} : vector<8x64xf32> to vector<1x64xf32>
    %357 = vector.broadcast %356 : vector<1x64xf32> to vector<8x64xf32>
    %358 = arith.mulf %355, %357 : vector<8x64xf32>
    %359 = vector.extract_strided_slice %304 {offsets = [5, 0], sizes = [1, 64], strides = [1, 1]} : vector<8x64xf32> to vector<1x64xf32>
    %360 = vector.broadcast %359 : vector<1x64xf32> to vector<8x64xf32>
    %361 = arith.addf %358, %360 : vector<8x64xf32>
    %362 = arith.addf %361, %279 : vector<8x64xf32>
    %363 = arith.truncf %362 : vector<8x64xf32> to vector<8x64xbf16>
    %c0_109 = arith.constant 0 : index
    %c0_110 = arith.constant 0 : index
    %364 = vector.load %arg14[%c0_109, %c0_110] : memref<64x512xbf16, #tpu.memory_space<vmem>>, vector<64x512xbf16>
    %cst_111 = arith.constant dense<0.000000e+00> : vector<8x512xf32>
    %365 = tpu.matmul %363, %364, %cst_111 {dimension_numbers = #tpu.dot_dimension_numbers<[1], [0], [0], [1], [0, 0, 1, 1], [], []>} : vector<8x64xbf16>, vector<64x512xbf16>, vector<8x512xf32> -> vector<8x512xf32>
    %cst_112 = arith.constant 0.000000e+00 : f32
    %366 = vector.broadcast %cst_112 : f32 to vector<8x512xf32>
    %367 = arith.maximumf %365, %366 : vector<8x512xf32>
    %368 = arith.truncf %367 : vector<8x512xf32> to vector<8x512xbf16>
    %c0_113 = arith.constant 0 : index
    %c0_114 = arith.constant 0 : index
    %369 = vector.load %arg15[%c0_113, %c0_114] : memref<512x64xbf16, #tpu.memory_space<vmem>>, vector<512x64xbf16>
    %cst_115 = arith.constant dense<0.000000e+00> : vector<8x64xf32>
    %370 = tpu.matmul %368, %369, %cst_115 {dimension_numbers = #tpu.dot_dimension_numbers<[1], [0], [0], [1], [0, 0, 1, 1], [], []>} : vector<8x512xbf16>, vector<512x64xbf16>, vector<8x64xf32> -> vector<8x64xf32>
    %371 = arith.addf %370, %362 : vector<8x64xf32>
    %cst_116 = arith.constant dense<0.000000e+00> : vector<8xf32>
    %372 = vector.multi_reduction <add>, %371, %cst_116 [1] : vector<8x64xf32> to vector<8xf32>
    %373 = vector.shape_cast %372 : vector<8xf32> to vector<8x1xf32>
    %cst_117 = arith.constant 6.400000e+01 : f32
    %374 = vector.broadcast %cst_117 : f32 to vector<8x1xf32>
    %375 = arith.divf %373, %374 : vector<8x1xf32>
    %376 = vector.broadcast %375 : vector<8x1xf32> to vector<8x64xf32>
    %377 = arith.subf %371, %376 : vector<8x64xf32>
    %378 = arith.mulf %377, %377 : vector<8x64xf32>
    %cst_118 = arith.constant dense<0.000000e+00> : vector<8xf32>
    %379 = vector.multi_reduction <add>, %378, %cst_118 [1] : vector<8x64xf32> to vector<8xf32>
    %380 = vector.shape_cast %379 : vector<8xf32> to vector<8x1xf32>
    %cst_119 = arith.constant 6.400000e+01 : f32
    %381 = vector.broadcast %cst_119 : f32 to vector<8x1xf32>
    %382 = arith.divf %380, %381 : vector<8x1xf32>
    %383 = vector.broadcast %375 : vector<8x1xf32> to vector<8x64xf32>
    %384 = arith.subf %371, %383 : vector<8x64xf32>
    %cst_120 = arith.constant 9.99999974E-6 : f32
    %385 = vector.broadcast %cst_120 : f32 to vector<8x1xf32>
    %386 = arith.addf %382, %385 : vector<8x1xf32>
    %387 = math.rsqrt %386 : vector<8x1xf32>
    %388 = vector.broadcast %387 : vector<8x1xf32> to vector<8x64xf32>
    %389 = arith.mulf %384, %388 : vector<8x64xf32>
    %c0_121 = arith.constant 0 : index
    %c0_122 = arith.constant 0 : index
    %390 = vector.load %arg16[%c0_121, %c0_122] : memref<1x64xf32, #tpu.memory_space<vmem>>, vector<1x64xf32>
    %391 = vector.broadcast %390 : vector<1x64xf32> to vector<8x64xf32>
    %392 = arith.mulf %389, %391 : vector<8x64xf32>
    %c0_123 = arith.constant 0 : index
    %c0_124 = arith.constant 0 : index
    %393 = vector.load %arg17[%c0_123, %c0_124] : memref<1x64xf32, #tpu.memory_space<vmem>>, vector<1x64xf32>
    %394 = vector.broadcast %393 : vector<1x64xf32> to vector<8x64xf32>
    %395 = arith.addf %392, %394 : vector<8x64xf32>
    %396 = vector.shape_cast %395 : vector<8x64xf32> to vector<1x8x64xf32>
    %c0_125 = arith.constant 0 : index
    %c0_126 = arith.constant 0 : index
    %c0_127 = arith.constant 0 : index
    %397 = vector.load %arg18[%c0_125, %c0_126, %c0_127] : memref<1x8x64xf32, #tpu.memory_space<vmem>>, vector<1x8x64xf32>
    tpu.vector_store %arg18[%c0_125, %c0_126, %c0_127], %396 {strides = array<i32>} : memref<1x8x64xf32, #tpu.memory_space<vmem>>, vector<1x8x64xf32>,
    return
  }
  func.func @transform_0(%arg0: i32) -> (i32, i32, i32) {
    %c0_i32 = arith.constant 0 : i32
    %c0_i32_0 = arith.constant 0 : i32
    %c0_i32_1 = arith.constant 0 : i32
    return %arg0, %c0_i32, %c0_i32_0 : i32, i32, i32
  }
  func.func @transform_1(%arg0: i32) -> (i32, i32, i32) {
    %c0_i32 = arith.constant 0 : i32
    %c0_i32_0 = arith.constant 0 : i32
    %c0_i32_1 = arith.constant 0 : i32
    return %arg0, %c0_i32, %c0_i32_0 : i32, i32, i32
  }
  func.func @transform_2(%arg0: i32) -> (i32, i32) {
    %c0_i32 = arith.constant 0 : i32
    %c0_i32_0 = arith.constant 0 : i32
    %c0_i32_1 = arith.constant 0 : i32
    return %c0_i32, %c0_i32_0 : i32, i32
  }
  func.func @transform_3(%arg0: i32) -> (i32, i32) {
    %c0_i32 = arith.constant 0 : i32
    %c0_i32_0 = arith.constant 0 : i32
    %c0_i32_1 = arith.constant 0 : i32
    return %c0_i32, %c0_i32_0 : i32, i32
  }
  func.func @transform_4(%arg0: i32) -> (i32, i32) {
    %c0_i32 = arith.constant 0 : i32
    %c0_i32_0 = arith.constant 0 : i32
    %c0_i32_1 = arith.constant 0 : i32
    return %c0_i32, %c0_i32_0 : i32, i32
  }
  func.func @transform_5(%arg0: i32) -> (i32, i32) {
    %c0_i32 = arith.constant 0 : i32
    %c0_i32_0 = arith.constant 0 : i32
    %c0_i32_1 = arith.constant 0 : i32
    return %c0_i32, %c0_i32_0 : i32, i32
  }
  func.func @transform_6(%arg0: i32) -> (i32, i32) {
    %c0_i32 = arith.constant 0 : i32
    %c0_i32_0 = arith.constant 0 : i32
    %c0_i32_1 = arith.constant 0 : i32
    return %c0_i32, %c0_i32_0 : i32, i32
  }
  func.func @transform_7(%arg0: i32) -> (i32, i32) {
    %c0_i32 = arith.constant 0 : i32
    %c0_i32_0 = arith.constant 0 : i32
    %c0_i32_1 = arith.constant 0 : i32
    return %c0_i32, %c0_i32_0 : i32, i32
  }
  func.func @transform_8(%arg0: i32) -> (i32, i32) {
    %c0_i32 = arith.constant 0 : i32
    %c0_i32_0 = arith.constant 0 : i32
    %c0_i32_1 = arith.constant 0 : i32
    return %c0_i32, %c0_i32_0 : i32, i32
  }
  func.func @transform_9(%arg0: i32) -> (i32, i32) {
    %c0_i32 = arith.constant 0 : i32
    %c0_i32_0 = arith.constant 0 : i32
    %c0_i32_1 = arith.constant 0 : i32
    return %c0_i32, %c0_i32_0 : i32, i32
  }
  func.func @transform_10(%arg0: i32) -> (i32, i32) {
    %c0_i32 = arith.constant 0 : i32
    %c0_i32_0 = arith.constant 0 : i32
    %c0_i32_1 = arith.constant 0 : i32
    return %c0_i32, %c0_i32_0 : i32, i32
  }
  func.func @transform_11(%arg0: i32) -> (i32, i32) {
    %c0_i32 = arith.constant 0 : i32
    %c0_i32_0 = arith.constant 0 : i32
    %c0_i32_1 = arith.constant 0 : i32
    return %c0_i32, %c0_i32_0 : i32, i32
  }
  func.func @transform_12(%arg0: i32) -> (i32, i32) {
    %c0_i32 = arith.constant 0 : i32
    %c0_i32_0 = arith.constant 0 : i32
    %c0_i32_1 = arith.constant 0 : i32
    return %c0_i32, %c0_i32_0 : i32, i32
  }
  func.func @transform_13(%arg0: i32) -> (i32, i32) {
    %c0_i32 = arith.constant 0 : i32
    %c0_i32_0 = arith.constant 0 : i32
    %c0_i32_1 = arith.constant 0 : i32
    return %c0_i32, %c0_i32_0 : i32, i32
  }
  func.func @transform_14(%arg0: i32) -> (i32, i32) {
    %c0_i32 = arith.constant 0 : i32
    %c0_i32_0 = arith.constant 0 : i32
    %c0_i32_1 = arith.constant 0 : i32
    return %c0_i32, %c0_i32_0 : i32, i32
  }
  func.func @transform_15(%arg0: i32) -> (i32, i32) {
    %c0_i32 = arith.constant 0 : i32
    %c0_i32_0 = arith.constant 0 : i32
    %c0_i32_1 = arith.constant 0 : i32
    return %c0_i32, %c0_i32_0 : i32, i32
  }
  func.func @transform_16(%arg0: i32) -> (i32, i32) {
    %c0_i32 = arith.constant 0 : i32
    %c0_i32_0 = arith.constant 0 : i32
    %c0_i32_1 = arith.constant 0 : i32
    return %c0_i32, %c0_i32_0 : i32, i32
  }
  func.func @transform_17(%arg0: i32) -> (i32, i32, i32) {
    %c0_i32 = arith.constant 0 : i32
    %c0_i32_0 = arith.constant 0 : i32
    %c0_i32_1 = arith.constant 0 : i32
    return %arg0, %c0_i32, %c0_i32_0 : i32, i32, i32
  }
  func.func @transform_18(%arg0: i32) -> (i32, i32, i32) {
    %c0_i32 = arith.constant 0 : i32
    %c0_i32_0 = arith.constant 0 : i32
    %c0_i32_1 = arith.constant 0 : i32
    return %arg0, %c0_i32, %c0_i32_0 : i32, i32, i32
  }
}

</mosaic_0001>

<bundles_post_ra>
// kernel: tpu_custom_call.1
= control target key start
LH: loop header
LB: loop body
LE: loop exit
PB: predicated region body
PF: predicated region fallthrough
CT: control target
= control target key end

     0   :  { %s5878_s0 = inlined_call_operand.vmem [shape: f32[2,8,64], index: 0, kind: input, shape index: {}]   ;;  %s5879_s1 = inlined_call_operand.vmem [shape: f32[2,8,8], index: 1, kind: input, shape index: {}]   ;;  %s5880_s2 = inlined_call_operand.vmem [shape: f32[8,1], index: 2, kind: input, shape index: {}]   ;;  %s5881_s3 = inlined_call_operand.vmem [shape: f32[8,1], index: 3, kind: input, shape index: {}]   ;;  %s5882_s4 = inlined_call_operand.vmem [shape: bf16[64,1536], index: 4, kind: input, shape index: {}]   ;;  %s5883_s5 = inlined_call_operand.vmem [shape: bf16[512,64], index: 5, kind: input, shape index: {}]   ;;  %s5884_s6 = inlined_call_operand.vmem [shape: f32[1,64], index: 6, kind: input, shape index: {}]   ;;  %s5885_s7 = inlined_call_operand.vmem [shape: f32[1,64], index: 7, kind: input, shape index: {}]   ;;  %s5886_s8 = inlined_call_operand.vmem [shape: f32[3,64], index: 8, kind: input, shape index: {}]   ;;  %s5887_s9 = inlined_call_operand.vmem [shape: f32[1,64], index: 9, kind: input, shape index: {}]   ;;  %s5888_s10 = inlined_call_operand.vmem [shape: f32[1,64], index: 10, kind: input, shape index: {}]   ;;  %s5889_s11 = inlined_call_operand.vmem [shape: f32[1,64], index: 11, kind: input, shape index: {}]   ;;  %s5890_s12 = inlined_call_operand.vmem [shape: f32[8,64], index: 12, kind: input, shape index: {}]   ;;  %s5891_s13 = inlined_call_operand.vmem [shape: bf16[64,512], index: 13, kind: input, shape index: {}]   ;;  %s5892_s14 = inlined_call_operand.vmem [shape: bf16[512,64], index: 14, kind: input, shape index: {}]   ;;  %s5893_s15 = inlined_call_operand.vmem [shape: f32[1,64], index: 15, kind: input, shape index: {}]   ;;  %s5894_s16 = inlined_call_operand.vmem [shape: f32[1,64], index: 16, kind: input, shape index: {}]   ;;  %s5895_s17 = inlined_call_operand.hbm [shape: f32[2,8,64], index: 17, kind: output, shape index: {0}]   ;;  %s5896_s18 = inlined_call_operand.hbm [shape: f32[2,8,64], index: 18, kind: output, shape index: {1}]  }
   0x1   :  { %5906 = sst [smem:[#allocation14_spill]] %s5878_s0 }
   0x2   :  { %5907 = sst [smem:[#allocation15_spill]] %s5879_s1 }
   0x3   :  { %5908 = sst [smem:[#allocation16_spill]] %s5880_s2 }
   0x4   :  { %5909 = sst [smem:[#allocation17_spill]] %s5881_s3 }
   0x5   :  { %5910 = sst [smem:[#allocation18_spill]] %s5882_s4 }
   0x6   :  { %5911 = sst [smem:[#allocation19_spill]] %s5895_s17 }
   0x7   :  { %24 = vsyncpa [#allocation3], 0 }
   0x8   :  { %26 = vsyncpa [#allocation3 + $0x1], 0 }
   0x9   :  { %27 = vsyncpa [#allocation5], 0 }
   0xa   :  { %29 = vsyncpa [#allocation5 + $0x1], 0  ;;  %s4941_s27 = smov 0   ;;  %s4943_s28 = smov 0  }
   0xb   :  { %s4945_s29 = smov 0   ;;  %s4947_s30 = smov 0  }
   0xc LB: > { %5912 = sst [smem:[#allocation8_spill]] %s4819_s27  ;;  %s4962_s0 = sadd.s32 4294967295, %s4831_s30   ;;  %s4831_s30 = sphi %s4947_s30, %s5931_s30   ;;  %s4827_s29 = sphi %s4945_s29, %s5933_s29   ;;  %s4823_s28 = sphi %s4943_s28, %s5935_s28   ;;  %s4819_s27 = sphi %s4941_s27, %s5934_s27  }
   0xd   : > { %5913 = sst [smem:[#allocation9_spill]] %s4827_s29  ;;  %s3805_s19 = sadd.s32 4294967294, %s4831_s30  }
   0xe   : > { %5914 = sst [smem:[#allocation10_spill]] %s4831_s30  ;;  %s4966_s1 = sadd.s32 1, %s4831_s30  }
   0xf   : > { %5915 = sst [smem:[#allocation11_spill]] %s4966_s1  ;;  %s409_s20 = sadd.s32 1, %s4827_s29 }
  0x10   : > { %s406_s21 = ssub.s32 %s4831_s30, %s4966_s1  ;;  %p419_p0 = scmp.ne.s32.totalorder %s4827_s29, %s4823_s28 }
  0x11   : > { %p407_p1 = scmp.eq.s32.totalorder %s406_s21, 0  ;;  %p420_p2 = scmp.eq.s32.totalorder %s4962_s0, 1 }
  0x12   : > { %p425_p3 = scmp.ne.s32.totalorder %s4823_s28, %s4819_s27  ;;  %p426_p4 = scmp.eq.s32.totalorder %s3805_s19, 1 }
  0x13   : > { %s4977_s22 = scalar_select %p407_p1, %s4827_s29, %s409_s20  }
  0x14   : > { %p4979_p5 = por %p420_p2, %p419_p0  ;;  %p4983_p6 = por %p426_p4, %p425_p3 }
  0x15   : > { %5916 = sst [smem:[#allocation12_spill]] %s4977_s22  ;;  %p3808_p7 = scmp.ge.s32.totalorder %s4831_s30, 1 }
  0x16   : > { %s5918_s23 = scalar_select %p4983_p6, 1, 0 }
  0x17   : > { %p529_p8 = scmp.lt.s32.totalorder %s4831_s30, 3 }
  0x18   : > { %5919 = sst [smem:[#allocation13_spill]] %s5918_s23 }
  0x19   : > { %p530_p9 = pnand %p3808_p7, %p529_p8 }
  0x1a   : > { %s5920_s4 = sld [smem:[#allocation18_spill]] (!%p530_p9)  ;;  %p591_p10 = scmp.lt.s32.totalorder (!%p530_p9), %s4962_s0, 1  ;;  %v4833_v2 = vmov (!%p530_p9), 0   ;;  %vm891_vm0 = vcmask (!%p530_p9), 523264   ;;  %v4835_v36 = vmov (!%p530_p9), 0.0   ;;  %vm4836_vm1 = vmmov (!%p530_p9), 0  }
  0x1b   : > { %533 = sbr.rel (%p530_p9) target bundleno = 4128 (0x1020), region = 88  ;;  %927 = vmatprep.mubr.bf16.mxu0 (!%p530_p9), %v4833_v2  ;;  %968 = vmatprep.mubr.bf16.mxu1 (!%p530_p9), %v4833_v2  ;;  %s5921_s27 = sld [smem:[#allocation14_spill]] (!%p530_p9)  ;;  %vm1308_vm2 = vcmask (!%p530_p9), 1043456   ;;  %vm1287_vm3 = vcmask (!%p530_p9), 64512   ;;  %vm1527_vm4 = vcmask (!%p530_p9), 130112   ;;  %vm1748_vm5 = vcmask (!%p530_p9), 195712  }
  0x1c   : > { %s4834_s24 = smov (!%p530_p9), 64   ;;  %s5924_s17 = sld [smem:[#allocation16_spill]] (!%p530_p9)  ;;  %vm1973_vm6 = vcmask (!%p530_p9), 261312   ;;  %vm2194_vm7 = vcmask (!%p530_p9), 326912   ;;  %vm2419_vm8 = vcmask (!%p530_p9), 392512   ;;  %vm2640_vm9 = vcmask (!%p530_p9), 458112  }
  0x1d   : > { %s5925_s3 = sld [smem:[#allocation17_spill]] (!%p530_p9)  ;;  %s4837_s19 = smov (!%p530_p9), 16   ;;  %vm2865_vm10 = vcmask (!%p530_p9), 523712  }
  0x1e   : > { %s4840_s23 = smov (!%p530_p9), 40  }
  0x20   : > { %v4536_v0 = vld [vmem:[%s5920_s4 + $0x4] ss:$48 sps:$4 sm:$0xff] (!%p530_p9)   ;;  %v4538_v1 = vld [vmem:[%s5920_s4] ss:$48 sps:$4 sm:$0xff] (!%p530_p9)   ;;  %v4572_v37 = vld [vmem:[%s5920_s4 + $0xc] ss:$48 sps:$4 sm:$0xff] (!%p530_p9)  }
  0x21   : > { %895 = vmatprep.subr.bf16.mxu0 (!%p530_p9), %v4536_v0  ;;  %v4539_v3 = vld [vmem:[%s5920_s4 + $0x64] ss:$48 sps:$4 sm:$0xff] (!%p530_p9)   ;;  %v4541_v4 = vld [vmem:[%s5920_s4 + $0x60] ss:$48 sps:$4 sm:$0xff] (!%p530_p9)   ;;  %v4574_v38 = vld [vmem:[%s5920_s4 + $0x8] ss:$48 sps:$4 sm:$0xff] (!%p530_p9)   ;;  %936 = vmatprep.subr.bf16.mxu1 (!%p530_p9), %v4572_v37 }
  0x22   : > { %s5002_s22 = scalar_select %p591_p10, %s4962_s0, 1  ;;  %896 = vmatpush1.bf16.msra.mxu0 %v4538_v1  ;;  %v4542_v5 = vld [vmem:[%s5920_s4 + $0xc4] ss:$48 sps:$4 sm:$0xff]   ;;  %v4544_v6 = vld [vmem:[%s5920_s4 + $0xc0] ss:$48 sps:$4 sm:$0xff]   ;;  %937 = vmatpush1.bf16.msra.mxu1 %v4574_v38 }
  0x23   : > { %897 = vmatprep.subr.bf16.mxu0 %v4539_v3  ;;  %v4545_v7 = vld [vmem:[%s5920_s4 + $0x124] ss:$48 sps:$4 sm:$0xff]   ;;  %v4547_v8 = vld [vmem:[%s5920_s4 + $0x120] ss:$48 sps:$4 sm:$0xff]   ;;  %v4575_v39 = vld [vmem:[%s5920_s4 + $0x6c] ss:$48 sps:$4 sm:$0xff]  }
  0x24   : > { %s5904_s29 = sshll.u32 %s5002_s22, 3  ;;  %v4550_v10 = vld [vmem:[%s5920_s4 + $0x14] ss:$48 sps:$4 sm:$0xff]   ;;  %v4548_v11 = vld [vmem:[%s5920_s4 + $0x10] ss:$48 sps:$4 sm:$0xff]   ;;  %938 = vmatprep.subr.bf16.mxu1 %v4575_v39  ;;  %s5922_s1 = sshll.u32 %s5002_s22, 3 }
  0x25   : > { %s5019_s30 = scalar_lea.vmem %s5921_s27, %s5904_s29  ;;  %v4553_v13 = vld [vmem:[%s5920_s4 + $0x74] ss:$48 sps:$4 sm:$0xff]   ;;  %v4551_v14 = vld [vmem:[%s5920_s4 + $0x70] ss:$48 sps:$4 sm:$0xff]   ;;  %v4577_v40 = vld [vmem:[%s5920_s4 + $0x68] ss:$48 sps:$4 sm:$0xff]  }
  0x26   : > { %898 = vmatpush1.bf16.msra.mxu0 %v4541_v4  ;;  %v600_v9 = vld [vmem:[%s5019_s30] sm:$0xff]  ;;  %v4578_v41 = vld [vmem:[%s5920_s4 + $0xcc] ss:$48 sps:$4 sm:$0xff]   ;;  %939 = vmatpush1.bf16.msra.mxu1 %v4577_v40  ;;  %v4580_v42 = vld [vmem:[%s5920_s4 + $0xc8] ss:$48 sps:$4 sm:$0xff]   ;;  %s5923_s27 = sld [smem:[#allocation15_spill]] }
  0x27   : > { %899 = vmatprep.subr.bf16.mxu0 %v4542_v5  ;;  %v5034_v12 = vpack.c.bf16 %v600_v9, %v600_v9  ;;  %v4556_v15 = vld [vmem:[%s5920_s4 + $0xd4] ss:$48 sps:$4 sm:$0xff]   ;;  %v4554_v16 = vld [vmem:[%s5920_s4 + $0xd0] ss:$48 sps:$4 sm:$0xff]   ;;  %940 = vmatprep.subr.bf16.mxu1 %v4578_v41  ;;  %v4581_v43 = vld [vmem:[%s5920_s4 + $0x12c] ss:$48 sps:$4 sm:$0xff]  }
  0x28   : > { %v4559_v17 = vld [vmem:[%s5920_s4 + $0x134] ss:$48 sps:$4 sm:$0xff]   ;;  %v4557_v18 = vld [vmem:[%s5920_s4 + $0x130] ss:$48 sps:$4 sm:$0xff]   ;;  %v4583_v44 = vld [vmem:[%s5920_s4 + $0x128] ss:$48 sps:$4 sm:$0xff]  }
  0x29   : > { %v4560_v24 = vld [vmem:[%s5920_s4 + $0x20] ss:$48 sps:$4 sm:$0xff]   ;;  %v4562_v25 = vld [vmem:[%s5920_s4 + $0x24] ss:$48 sps:$4 sm:$0xff]   ;;  %v4586_v45 = vld [vmem:[%s5920_s4 + $0x1c] ss:$48 sps:$4 sm:$0xff]  }
  0x2a   : > { %900 = vmatpush1.bf16.msra.mxu0 %v4544_v6  ;;  %v4565_v26 = vld [vmem:[%s5920_s4 + $0x84] ss:$48 sps:$4 sm:$0xff]   ;;  %v4563_v27 = vld [vmem:[%s5920_s4 + $0x80] ss:$48 sps:$4 sm:$0xff]   ;;  %941 = vmatpush1.bf16.msra.mxu1 %v4580_v42  ;;  %v4584_v46 = vld [vmem:[%s5920_s4 + $0x18] ss:$48 sps:$4 sm:$0xff]  }
  0x2b   : > { %901 = vmatprep.subr.bf16.mxu0 %v4545_v7  ;;  %v4568_v28 = vld [vmem:[%s5920_s4 + $0xe4] ss:$48 sps:$4 sm:$0xff]   ;;  %v4566_v29 = vld [vmem:[%s5920_s4 + $0xe0] ss:$48 sps:$4 sm:$0xff]   ;;  %942 = vmatprep.subr.bf16.mxu1 %v4581_v43  ;;  %v4589_v47 = vld [vmem:[%s5920_s4 + $0x7c] ss:$48 sps:$4 sm:$0xff]  }
  0x2c   : > { %v4569_v32 = vld [vmem:[%s5920_s4 + $0x140] ss:$48 sps:$4 sm:$0xff]   ;;  %v4571_v33 = vld [vmem:[%s5920_s4 + $0x144] ss:$48 sps:$4 sm:$0xff]   ;;  %v4587_v48 = vld [vmem:[%s5920_s4 + $0x78] ss:$48 sps:$4 sm:$0xff]   ;;  %s598_s20 = scalar_lea.vmem %s5923_s27, %s5922_s1 }
  0x2d   : > { %v4592_v49 = vld [vmem:[%s5920_s4 + $0xdc] ss:$48 sps:$4 sm:$0xff]   ;;  %v4590_v50 = vld [vmem:[%s5920_s4 + $0xd8] ss:$48 sps:$4 sm:$0xff]   ;;  %s5273_s22 = sand.u32 1, %s4823_s28   ;;  %s4838_s1 = smov 24  }
  0x2e   : > { %902 = vmatpush1.bf16.msra.mxu0 %v4547_v8  ;;  %943 = vmatpush1.bf16.msra.mxu1 %v4583_v44  ;;  %v4595_v51 = vld [vmem:[%s5920_s4 + $0x13c] ss:$48 sps:$4 sm:$0xff]   ;;  %v4593_v52 = vld [vmem:[%s5920_s4 + $0x138] ss:$48 sps:$4 sm:$0xff]   ;;  %s3809_s21 = sshll.u32 %s5273_s22, 3  ;;  %s4841_s29 = smov 48  }
  0x2f   : > { %977 = vmatprep.subr.bf16.mxu0 %v4550_v10  ;;  %1018 = vmatprep.subr.bf16.mxu1 %v4586_v45  ;;  %v4596_v4 = vld [vmem:[%s5920_s4 + $0x28] ss:$48 sps:$4 sm:$0xff]   ;;  %v4598_v5 = vld [vmem:[%s5920_s4 + $0x2c] ss:$48 sps:$4 sm:$0xff]   ;;  %s5279_s25 = scalar_lea.vmem [#allocation4], %s3809_s21  ;;  %s4842_s27 = smov 8  }
  0x30   : > { %v4599_v6 = vld [vmem:[%s5920_s4 + $0x88] ss:$48 sps:$4 sm:$0xff]   ;;  %v4601_v7 = vld [vmem:[%s5920_s4 + $0x8c] ss:$48 sps:$4 sm:$0xff]  }
  0x31   : > { %3861 = vmatmul.mubr.msk.bf16.vlgmr.msra.gmra.mrb[0].mxu0 %vm891_vm0, %v5034_v12  ;;  %3862 = vmatmul.mubr.msk.bf16.vlgmr.msra.gmra.mrb[0].mxu1 %vm891_vm0, %v5034_v12  ;;  %v4602_v8 = vld [vmem:[%s5920_s4 + $0xe8] ss:$48 sps:$4 sm:$0xff]   ;;  %v4604_v9 = vld [vmem:[%s5920_s4 + $0xec] ss:$48 sps:$4 sm:$0xff]  }
  0x32   : > { %978 = vmatpush1.bf16.msra.mxu0 %v4548_v11  ;;  %1009 = vmatprep.mubr.bf16.mxu0 %v4833_v2 }
  0x33   : > { %979 = vmatprep.subr.bf16.mxu0 %v4553_v13  ;;  %1019 = vmatpush1.bf16.msra.mxu1 %v4584_v46 }
  0x34   : > { %1050 = vmatprep.mubr.bf16.mxu1 %v4833_v2  ;;  %1020 = vmatprep.subr.bf16.mxu1 %v4589_v47 }
  0x36   : > { %980 = vmatpush1.bf16.msra.mxu0 %v4551_v14  ;;  %v4605_v14 = vld [vmem:[%s5920_s4 + $0x148] ss:$48 sps:$4 sm:$0xff]  }
  0x37   : > { %981 = vmatprep.subr.bf16.mxu0 %v4556_v15  ;;  %1021 = vmatpush1.bf16.msra.mxu1 %v4587_v48  ;;  %v4607_v15 = vld [vmem:[%s5920_s4 + $0x14c] ss:$48 sps:$4 sm:$0xff]  }
  0x38   : > { %1022 = vmatprep.subr.bf16.mxu1 %v4592_v49 }
  0x3a   : > { %982 = vmatpush1.bf16.msra.mxu0 %v4554_v16 }
  0x3b   : > { %983 = vmatprep.subr.bf16.mxu0 %v4559_v17  ;;  %1023 = vmatpush1.bf16.msra.mxu1 %v4590_v50 }
  0x3c   : > { %1024 = vmatprep.subr.bf16.mxu1 %v4595_v51 }
  0x3e   : > { %984 = vmatpush1.bf16.msra.mxu0 %v4557_v18 }
  0x3f   : > { %1059 = vmatprep.subr.bf16.mxu0 %v4562_v25  ;;  %1025 = vmatpush1.bf16.msra.mxu1 %v4593_v52 }
  0x40   : > { %1100 = vmatprep.subr.bf16.mxu1 %v4598_v5 }
  0x41   : > { %3863 = vmatmul.mubr.msk.bf16.vlgmr.msra.gmra.mrb[4].mxu0 %vm891_vm0, %v5034_v12 }
  0x42   : > { %1091 = vmatprep.mubr.bf16.mxu0 %v4833_v2  ;;  %1060 = vmatpush1.bf16.msra.mxu0 %v4560_v24 }
  0x43   : > { %1061 = vmatprep.subr.bf16.mxu0 %v4565_v26  ;;  %3864 = vmatmul.mubr.msk.bf16.vlgmr.msra.gmra.mrb[4].mxu1 %vm891_vm0, %v5034_v12 }
  0x44   : > { %1132 = vmatprep.mubr.bf16.mxu1 %v4833_v2  ;;  %1101 = vmatpush1.bf16.msra.mxu1 %v4596_v4 }
  0x45   : > { %1102 = vmatprep.subr.bf16.mxu1 %v4601_v7 }
  0x46   : > { %1062 = vmatpush1.bf16.msra.mxu0 %v4563_v27 }
  0x47   : > { %1063 = vmatprep.subr.bf16.mxu0 %v4568_v28 }
  0x48   : > { %1103 = vmatpush1.bf16.msra.mxu1 %v4599_v6 }
  0x49   : > { %1104 = vmatprep.subr.bf16.mxu1 %v4604_v9 }
  0x4a   : > { %1064 = vmatpush1.bf16.msra.mxu0 %v4566_v29 }
  0x4b   : > { %1065 = vmatprep.subr.bf16.mxu0 %v4571_v33 }
  0x4c   : > { %1105 = vmatpush1.bf16.msra.mxu1 %v4602_v8 }
  0x4d   : > { %1106 = vmatprep.subr.bf16.mxu1 %v4607_v15 }
  0x4e   : > { %1066 = vmatpush1.bf16.msra.mxu0 %v4569_v32 }
  0x4f   : > { %4126 = vmatprep.subr.bf16.mxu0 %v4835_v36 }
  0x50   : > { %1107 = vmatpush1.bf16.msra.mxu1 %v4605_v14 }
  0x51   : > { %3865 = vmatmul.mubr.msk.bf16.vlgmr.msra.gmra.mrb[8].mxu0 %vm891_vm0, %v5034_v12  ;;  %4138 = vmatprep.subr.bf16.mxu1 %v4835_v36 }
  0x52   : > { %4134 = vmatprep.mubr.msk.bf16.mxu0 %vm4836_vm1, %v4835_v36 }
  0x53   : > { %3866 = vmatmul.mubr.msk.bf16.vlgmr.msra.gmra.mrb[8].mxu1 %vm891_vm0, %v5034_v12 }
  0x54   : > { %4140 = vmatprep.mubr.msk.bf16.mxu1 %vm4836_vm1, %v4835_v36 }
 0x104   : > { %v929_v19 = vpop.f32.mrb[0].mxu0 }
 0x105   : > { %v5060_v20 = vpack.c.bf16 %v929_v19, %v929_v19  ;;  %v5062_v21 = vpop.f32.mrb[1].mxu0 }
 0x106   : > { %v933_v22 = vpop.f32.mrb[2].mxu0  ;;  %v5201_v19 = vpack.c.bf16 %v5062_v21, %v5062_v21 }
 0x107   : > { %v934_v23 = vpop.f32.mrb[3].mxu0  ;;  %1462 = vrot.lane.b32.xlu1 %v5060_v20, %s4834_s24 }
 0x114   : > { %v1011_v30 = vpop.f32.mrb[4].mxu0 }
 0x115   : > { %1206 = vxpose.xlu0.b32.start.end [1/1] (short) (narrow) %v1011_v30, 64  ;;  %v5084_v31 = vpop.f32.mrb[5].mxu0 }
 0x116   : > { %1868 = vrot.lane.b32.xlu1 %v5084_v31, %s4834_s24  ;;  %v1015_v34 = vpop.f32.mrb[6].mxu0 }
 0x117   : > { %v1016_v35 = vpop.f32.mrb[7].mxu0 }
 0x124   : > { %v1093_v10 = vpop.f32.mrb[8].mxu0 }
 0x125   : > { %v5181_v11 = vpack.c.bf16 %v1093_v10, %v1093_v10  ;;  %v5183_v13 = vpop.f32.mrb[9].mxu0 }
 0x126   : > { %v1097_v16 = vpop.f32.mrb[10].mxu0 }
 0x127   : > { %v1098_v17 = vpop.f32.mrb[11].mxu0  ;;  %v1310_v18 = vsel %vm1308_vm2, %v5181_v11, 0 }
 0x128   : > { %4139 = vmatpush3.bf16.msra.mxu1 %v1310_v18 }
 0x129   : > { %4144 = vmatprep.subr.bf16.mxu1 %v4835_v36 }
 0x15a   : > { %1422 = vrot.lane.b32.xlu0 %v1011_v30, %s4834_s24 }
 0x179   : > { %v1463_v27 = vpop.permute.xlu1 %1462 }
 0x188   : > { %v5214_v21 = vpop.permute.xlu1 %1868 }
 0x195   : > { %v1222_v53 = vpop.trf.xlu0 }
 0x199   : > { %v1223_v54 = vpop.trf.xlu0 }
 0x19a   : > { %v1238_v55 = vpack.c.bf16 %v1223_v54, %v1222_v53 }
 0x19c   : > { %4127 = vmatpush3.bf16.msra.mxu0 %v1238_v55 }
 0x19d   : > { %v1224_v56 = vpop.trf.xlu0  ;;  %4128 = vmatprep.subr.bf16.mxu0 %v4835_v36 }
 0x1a1   : > { %v1225_v57 = vpop.trf.xlu0 }
 0x1a2   : > { %v1239_v58 = vpack.c.bf16 %v1225_v57, %v1224_v56 }
 0x1a4   : > { %4129 = vmatpush3.bf16.msra.mxu0 %v1239_v58 }
 0x1a5   : > { %v1226_v59 = vpop.trf.xlu0  ;;  %4130 = vmatprep.subr.bf16.mxu0 %v4835_v36 }
 0x1a9   : > { %v1227_v60 = vpop.trf.xlu0 }
 0x1aa   : > { %v1240_v61 = vpack.c.bf16 %v1227_v60, %v1226_v59 }
 0x1ac   : > { %4131 = vmatpush3.bf16.msra.mxu0 %v1240_v61 }
 0x1ad   : > { %v1228_v62 = vpop.trf.xlu0  ;;  %4132 = vmatprep.subr.bf16.mxu0 %v4835_v36 }
 0x1b1   : > { %v1229_v63 = vpop.trf.xlu0 }
 0x1b2   : > { %v1241_v0 = vpack.c.bf16 %v1229_v63, %v1228_v62  ;;  %v5237_v63 = vld [vmem:[%s598_s20] sm:$0xff]  ;;  %s4843_s20 = smov 56  }
 0x1b4   : > { %4133 = vmatpush3.bf16.msra.mxu0 %v1241_v0 }
 0x1b5   : > { %4156 = vmatprep.subr.bf16.mxu0 %v4835_v36 }
 0x1b7   : > { %4135 = vmatmul.mubr.msk.bf16.vlgmr.msra.gmra.mrb[12].mxu0 %vm891_vm0, %v5060_v20  ;;  %v5205_v20 = vpop.f32.mrb[0].mxu1 }
 0x1b8   : > { %4164 = vmatprep.mubr.msk.bf16.mxu0 %vm4836_vm1, %v4835_v36  ;;  %v5207_v22 = vpop.f32.mrb[1].mxu1 }
 0x1b9   : > { %v974_v23 = vpop.f32.mrb[2].mxu1 }
 0x1ba   : > { %v975_v24 = vpop.f32.mrb[3].mxu1 }
 0x1bb   : > { %v5209_v12 = vpop.f32.mrb[4].mxu1 }
 0x1bc   : > { %v5212_v25 = vpop.f32.mrb[5].mxu1 }
 0x1bd   : > { %v1056_v26 = vpop.f32.mrb[6].mxu1 }
 0x1be   : > { %v1057_v28 = vpop.f32.mrb[7].mxu1 }
 0x1cc   : > { %v1423_v1 = vpop.permute.xlu0 %1422 }
 0x1cd   : > { %v4450_v3 = vpack.i.bf16 %v5084_v31, %v1423_v1 }
 0x1cf   : > { %4451 = vxpose.xlu1.b32.start.end [1/1] (short) (narrow) %v4450_v3, 64 }
 0x209   : > { %1908 = vrot.lane.b32.xlu1 %v5201_v19, %s4834_s24 }
 0x232   : > { %2095 = vxpose.xlu1.b32.start.end [1/1] (short) (narrow) %v5209_v12, 64 }
 0x24f   : > { %v4452_v29 = vpop.trf.xlu1 }
 0x250   : > { %v4453_v30 = vunpack.i.l.bf16 %v4452_v29  ;;  %4534 = vset.pattern.permute.xlu1 %v4833_v2  ;;  %v4456_v47 = vunpack.i.h.bf16 %v4452_v29 }
 0x253   : > { %v4457_v31 = vpop.trf.xlu1 }
 0x254   : > { %v4458_v32 = vunpack.i.l.bf16 %v4457_v31  ;;  %v4461_v49 = vunpack.i.h.bf16 %v4457_v31 }
 0x256   : > { %v1457_v33 = vpack.c.bf16 %v4458_v32, %v4453_v30  ;;  %v1681_v54 = vpack.c.bf16 %v4461_v49, %v4456_v47 }
 0x257   : > { %v4462_v34 = vpop.trf.xlu1 }
 0x258   : > { %4157 = vmatpush3.bf16.msra.mxu0 %v1457_v33  ;;  %v4463_v35 = vunpack.i.l.bf16 %v4462_v34  ;;  %v4466_v52 = vunpack.i.h.bf16 %v4462_v34 }
 0x259   : > { %4158 = vmatprep.subr.bf16.mxu0 %v4835_v36 }
 0x25b   : > { %v4467_v37 = vpop.trf.xlu1 }
 0x25c   : > { %v4468_v38 = vunpack.i.l.bf16 %v4467_v37  ;;  %v4471_v53 = vunpack.i.h.bf16 %v4467_v37 }
 0x25e   : > { %v1458_v39 = vpack.c.bf16 %v4468_v38, %v4463_v35  ;;  %v1682_v57 = vpack.c.bf16 %v4471_v53, %v4466_v52  ;;  %v2094_v52 = vpack.c.bf16 %v5205_v20, %v5205_v20 }
 0x25f   : > { %v4472_v40 = vpop.trf.xlu1 }
 0x260   : > { %4159 = vmatpush3.bf16.msra.mxu0 %v1458_v39  ;;  %v4473_v41 = vunpack.i.l.bf16 %v4472_v40  ;;  %v4476_v55 = vunpack.i.h.bf16 %v4472_v40 }
 0x261   : > { %4160 = vmatprep.subr.bf16.mxu0 %v4835_v36 }
 0x263   : > { %v4477_v42 = vpop.trf.xlu1 }
 0x264   : > { %v4478_v43 = vunpack.i.l.bf16 %v4477_v42  ;;  %v4481_v56 = vunpack.i.h.bf16 %v4477_v42 }
 0x266   : > { %v1459_v44 = vpack.c.bf16 %v4478_v43, %v4473_v41  ;;  %v1683_v60 = vpack.c.bf16 %v4481_v56, %v4476_v55 }
 0x267   : > { %v4482_v45 = vpop.trf.xlu1 }
 0x268   : > { %4161 = vmatpush3.bf16.msra.mxu0 %v1459_v44  ;;  %v4483_v46 = vunpack.i.l.bf16 %v4482_v45  ;;  %v4486_v58 = vunpack.i.h.bf16 %v4482_v45 }
 0x269   : > { %4162 = vmatprep.subr.bf16.mxu0 %v4835_v36 }
 0x26b   : > { %v4487_v48 = vpop.trf.xlu1 }
 0x26c   : > { %v4488_v50 = vunpack.i.l.bf16 %v4487_v48  ;;  %v4491_v59 = vunpack.i.h.bf16 %v4487_v48 }
 0x26e   : > { %v1460_v51 = vpack.c.bf16 %v4488_v50, %v4483_v46  ;;  %v1684_v61 = vpack.c.bf16 %v4491_v59, %v4486_v58 }
 0x270   : > { %4163 = vmatpush3.bf16.msra.mxu0 %v1460_v51 }
 0x271   : > { %4186 = vmatprep.subr.bf16.mxu0 %v4835_v36 }
 0x273   : > { %4165 = vmatmul.mubr.msk.bf16.vlgmr.msra.gmra.mrb[16].mxu0 %vm891_vm0, %v1463_v27 }
 0x274   : > { %4187 = vmatpush3.bf16.msra.mxu0 %v1681_v54  ;;  %4194 = vmatprep.mubr.msk.bf16.mxu0 %vm4836_vm1, %v4835_v36 }
 0x275   : > { %4188 = vmatprep.subr.bf16.mxu0 %v4835_v36 }
 0x278   : > { %4189 = vmatpush3.bf16.msra.mxu0 %v1682_v57 }
 0x279   : > { %4190 = vmatprep.subr.bf16.mxu0 %v4835_v36 }
 0x27b   : > { %v1909_v15 = vpop.permute.xlu1 %1908 }
 0x27c   : > { %4191 = vmatpush3.bf16.msra.mxu0 %v1683_v60 }
 0x27d   : > { %4192 = vmatprep.subr.bf16.mxu0 %v4835_v36 }
 0x280   : > { %4193 = vmatpush3.bf16.msra.mxu0 %v1684_v61  ;;  %v4608_v61 = vld [vmem:[%s5883_s5] sm:$0xff]  }
 0x281   : > { %4216 = vmatprep.subr.bf16.mxu0 %v4835_v36 }
 0x283   : > { %4195 = vmatmul.mubr.msk.bf16.vlgmr.msra.gmra.mrb[20].mxu0 %vm891_vm0, %v5201_v19 }
 0x284   : > { %4224 = vmatprep.mubr.msk.bf16.mxu0 %vm4836_vm1, %v4835_v36 }
 0x28a   : > { %v1279_v62 = vpop.f32.mrb[12].mxu0 }
 0x28b   : > { %v1285_v0 = vmul.f32 0.125, %v1279_v62  ;;  %v4136_v1 = vpop.f32.mrb[13].mxu0  ;;  %v1134_v62 = vpop.f32.mrb[8].mxu1 }
 0x28c   : > { %v1282_v3 = vpop.f32.mrb[14].mxu0  ;;  %v5291_v1 = vpop.f32.mrb[9].mxu1 }
 0x28d   : > { %v4137_v4 = vpop.f32.mrb[15].mxu0  ;;  %v1286_v5 = vadd.f32 %v1285_v0, %v5237_v63  ;;  %v5289_v0 = vpack.c.bf16 %v1134_v62, %v1134_v62  ;;  %v4609_v3 = vld [vmem:[%s5883_s5 + $0x8] sm:$0xff]  }
 0x28e   : > { %v1138_v4 = vpop.f32.mrb[10].mxu1 }
 0x28f   : > { %v1288_v6 = vsel %vm1287_vm3, %v1286_v5, -inf }
 0x290   : > { %1289 = vmax.xlane.f32.xlu0 %v1288_v6  ;;  %v1139_v6 = vpop.f32.mrb[11].mxu1 }
 0x2b2   : > { %v2111_v16 = vpop.trf.xlu1 }
 0x2b6   : > { %v2112_v23 = vpop.trf.xlu1 }
 0x2b7   : > { %v2127_v49 = vpack.c.bf16 %v2112_v23, %v2111_v16 }
 0x2ba   : > { %v2113_v29 = vpop.trf.xlu1 }
 0x2bd   : > { %1871 = vxpose.xlu0.b32.start.end [1/1] (short) (narrow) %v5214_v21, 64 }
 0x2be   : > { %v2114_v37 = vpop.trf.xlu1 }
 0x2bf   : > { %v2128_v51 = vpack.c.bf16 %v2114_v37, %v2113_v29 }
 0x2c2   : > { %v2115_v41 = vpop.trf.xlu1 }
 0x2c6   : > { %v2116_v48 = vpop.trf.xlu1 }
 0x2c7   : > { %v2129_v53 = vpack.c.bf16 %v2116_v48, %v2115_v41 }
 0x2ca   : > { %v2117_v50 = vpop.trf.xlu1 }
 0x2ce   : > { %v2118_v54 = vpop.trf.xlu1 }
 0x2cf   : > { %v2130_v55 = vpack.c.bf16 %v2118_v54, %v2117_v50 }
 0x31d   : > { %v1290_v7 = vpop.xlane.xlu0 %1289 }
 0x31e   : > { %v1291_v8 = vsub.f32 %v1286_v5, %v1290_v7  ;;  %v2202_v5 = vsel %vm1308_vm2, %v5289_v0, 0  ;;  %v4610_v7 = vld [vmem:[%s5883_s5 + $0x10] sm:$0xff]  }
 0x320   : > { %v1292_v9 = vmul.f32 1.442695, %v1291_v8  ;;  %v4611_v8 = vld [vmem:[%s5883_s5 + $0x18] sm:$0xff]  }
 0x322   : > { %4696 = vpow2.f32 %v1292_v9 }
 0x32c   : > { %v5242_v10 = vpop.eup %4696 }
 0x32d   : > { %v1294_v14 = vsel %vm1287_vm3, %v5242_v10, 0.0 }
 0x32e   : > { %1295 = vadd.xlane.f32.xlu1 %v1294_v14 }
 0x33d   : > { %v1887_v17 = vpop.trf.xlu0 }
 0x341   : > { %v1888_v18 = vpop.trf.xlu0 }
 0x342   : > { %v1903_v19 = vpack.c.bf16 %v1888_v18, %v1887_v17 }
 0x344   : > { %4217 = vmatpush3.bf16.msra.mxu0 %v1903_v19 }
 0x345   : > { %v1889_v24 = vpop.trf.xlu0  ;;  %4218 = vmatprep.subr.bf16.mxu0 %v4835_v36 }
 0x346   : > { %v1501_v26 = vpop.f32.mrb[16].mxu0 }
 0x347   : > { %v1507_v27 = vmul.f32 0.125, %v1501_v26  ;;  %v4166_v28 = vpop.f32.mrb[17].mxu0 }
 0x348   : > { %v1504_v21 = vpop.f32.mrb[18].mxu0 }
 0x349   : > { %v1890_v30 = vpop.trf.xlu0  ;;  %v4167_v31 = vpop.f32.mrb[19].mxu0  ;;  %v5248_v32 = vadd.f32 %v1507_v27, %v5237_v63 }
 0x34a   : > { %v1904_v33 = vpack.c.bf16 %v1890_v30, %v1889_v24 }
 0x34b   : > { %v1509_v34 = vsel %vm1287_vm3, %v5248_v32, -inf }
 0x34c   : > { %4219 = vmatpush3.bf16.msra.mxu0 %v1904_v33  ;;  %1510 = vmax.xlane.f32.xlu0 %v1509_v34 }
 0x34d   : > { %v1891_v35 = vpop.trf.xlu0  ;;  %4220 = vmatprep.subr.bf16.mxu0 %v4835_v36 }
 0x351   : > { %v1892_v38 = vpop.trf.xlu0 }
 0x352   : > { %v1905_v39 = vpack.c.bf16 %v1892_v38, %v1891_v35 }
 0x354   : > { %4221 = vmatpush3.bf16.msra.mxu0 %v1905_v39 }
 0x355   : > { %v1893_v40 = vpop.trf.xlu0  ;;  %4222 = vmatprep.subr.bf16.mxu0 %v4835_v36 }
 0x356   : > { %v5254_v42 = vpop.f32.mrb[20].mxu0 }
 0x357   : > { %v4196_v43 = vpop.f32.mrb[21].mxu0 }
 0x358   : > { %v1725_v44 = vpop.f32.mrb[22].mxu0 }
 0x359   : > { %v1894_v45 = vpop.trf.xlu0  ;;  %v4197_v46 = vpop.f32.mrb[23].mxu0 }
 0x35a   : > { %v1906_v47 = vpack.c.bf16 %v1894_v45, %v1893_v40  ;;  %v1728_v45 = vmul.f32 0.125, %v5254_v42 }
 0x35c   : > { %4223 = vmatpush3.bf16.msra.mxu0 %v1906_v47  ;;  %v1729_v50 = vadd.f32 %v1728_v45, %v5237_v63 }
 0x35d   : > { %4246 = vmatprep.subr.bf16.mxu0 %v4835_v36 }
 0x35f   : > { %4225 = vmatmul.mubr.msk.bf16.vlgmr.msra.gmra.mrb[24].mxu0 %vm891_vm0, %v1909_v15 }
 0x360   : > { %4247 = vmatpush3.bf16.msra.mxu0 %v2127_v49  ;;  %4254 = vmatprep.mubr.msk.bf16.mxu0 %vm4836_vm1, %v4835_v36 }
 0x361   : > { %4248 = vmatprep.subr.bf16.mxu0 %v4835_v36 }
 0x362   : > { %1531 = vrot.lane.b32.xlu0 %v5181_v11, %s4834_s24 }
 0x364   : > { %4249 = vmatpush3.bf16.msra.mxu0 %v2128_v51 }
 0x365   : > { %4250 = vmatprep.subr.bf16.mxu0 %v4835_v36 }
 0x366   : > { %2354 = vrot.lane.b32.xlu0 %v2094_v52, %s4834_s24 }
 0x368   : > { %4251 = vmatpush3.bf16.msra.mxu0 %v2129_v53  ;;  %v1730_v53 = vsel %vm1287_vm3, %v1729_v50, -inf }
 0x369   : > { %4252 = vmatprep.subr.bf16.mxu0 %v4835_v36 }
 0x36c   : > { %4253 = vmatpush3.bf16.msra.mxu0 %v2130_v55 }
 0x36d   : > { %4258 = vmatprep.subr.bf16.mxu0 %v4835_v36 }
 0x36f   : > { %4255 = vmatmul.mubr.msk.bf16.vlgmr.msra.gmra.mrb[28].mxu0 %vm891_vm0, %v2094_v52 }
 0x370   : > { %4260 = vmatprep.mubr.msk.bf16.mxu0 %vm4836_vm1, %v4835_v36  ;;  %4259 = vmatpush3.bf16.msra.mxu0 %v2202_v5 }
 0x371   : > { %4276 = vmatprep.subr.bf16.mxu0 %v4835_v36 }
 0x3bb   : > { %v1296_v11 = vpop.xlane.xlu1 %1295 }
 0x3bc   : > { %4698 = vrcp.f32 %v1296_v11 }
 0x3c6   : > { %v4699_v20 = vpop.eup %4698 }
 0x3c7   : > { %v1298_v56 = vmul.f32 %v4699_v20, %v1296_v11 }
 0x3c9   : > { %v1299_v57 = vsub.f32 2.0, %v1298_v56  ;;  %v4612_v56 = vld [vmem:[%s5883_s5 + $0x20] sm:$0xff]  }
 0x3cb   : > { %v1300_v58 = vmul.f32 %v4699_v20, %v1299_v57  ;;  %v4613_v57 = vld [vmem:[%s5883_s5 + $0x28] sm:$0xff]  }
 0x3cd   : > { %v1301_v59 = vmul.f32 %v5242_v10, %v1300_v58  ;;  %v4614_v58 = vld [vmem:[%s5883_s5 + $0x30] sm:$0xff]  }
 0x3cf   : > { %v1303_v60 = vpack.c.bf16 %v1301_v59, %v1301_v59  ;;  %1302 = vst.msk [vmem:[%s5279_s25] sm:$0xff] %vm1287_vm3, %v1301_v59  ;;  %v4615_v59 = vld [vmem:[%s5883_s5 + $0x38] sm:$0xff]  }
 0x3d1   : > { %4141 = vmatmul.mubr.msk.bf16.vlgmr.msra.gmra.mrb[12].mxu1 %vm1287_vm3, %v1303_v60 }
 0x3d2   : > { %4152 = vmatprep.mubr.msk.bf16.mxu1 %vm4836_vm1, %v4835_v36  ;;  %4145 = vmatpush3.bf16.msra.mxu1 %v4608_v61 }
 0x3d3   : > { %4146 = vmatprep.subr.bf16.mxu1 %v4835_v36 }
 0x3d6   : > { %4147 = vmatpush3.bf16.msra.mxu1 %v4609_v3 }
 0x3d7   : > { %4148 = vmatprep.subr.bf16.mxu1 %v4835_v36 }
 0x3d9   : > { %v1511_v10 = vpop.xlane.xlu0 %1510 }
 0x3da   : > { %4149 = vmatpush3.bf16.msra.mxu1 %v4610_v7  ;;  %v1512_v17 = vsub.f32 %v5248_v32, %v1511_v10 }
 0x3db   : > { %4150 = vmatprep.subr.bf16.mxu1 %v4835_v36 }
 0x3dc   : > { %v1513_v18 = vmul.f32 1.442695, %v1512_v17 }
 0x3dd   : > { %v1532_v31 = vpop.permute.xlu0 %1531 }
 0x3de   : > { %4151 = vmatpush3.bf16.msra.mxu1 %v4611_v8  ;;  %4700 = vpow2.f32 %v1513_v18  ;;  %v1537_v37 = vsel %vm1308_vm2, %v1532_v31, 0 }
 0x3df   : > { %4168 = vmatprep.subr.bf16.mxu1 %v4835_v36 }
 0x3e1   : > { %v2355_v60 = vpop.permute.xlu0 %2354 }
 0x3e8   : > { %v4701_v29 = vpop.eup %4700 }
 0x3e9   : > { %v1515_v30 = vsel %vm1287_vm3, %v4701_v29, 0.0 }
 0x432   : > { %v1947_v9 = vpop.f32.mrb[24].mxu0 }
 0x433   : > { %v4226_v14 = vpop.f32.mrb[25].mxu0  ;;  %v1953_v48 = vmul.f32 0.125, %v1947_v9 }
 0x434   : > { %v1950_v15 = vpop.f32.mrb[26].mxu0 }
 0x435   : > { %v4227_v16 = vpop.f32.mrb[27].mxu0  ;;  %v5326_v54 = vadd.f32 %v1953_v48, %v5237_v63 }
 0x437   : > { %v1955_v42 = vsel %vm1287_vm3, %v5326_v54, -inf }
 0x442   : > { %v2168_v19 = vpop.f32.mrb[28].mxu0 }
 0x443   : > { %v2174_v23 = vmul.f32 0.125, %v2168_v19  ;;  %v4256_v24 = vpop.f32.mrb[29].mxu0 }
 0x444   : > { %v2171_v26 = vpop.f32.mrb[30].mxu0 }
 0x445   : > { %v4257_v27 = vpop.f32.mrb[31].mxu0  ;;  %v2175_v28 = vadd.f32 %v2174_v23, %v5237_v63 }
 0x447   : > { %v2176_v21 = vsel %vm1287_vm3, %v2175_v28, -inf }
 0x448   : > { %2177 = vmax.xlane.f32.xlu1 %v2176_v21 }
 0x44c   : > { %1516 = vadd.xlane.f32.xlu1 %v1515_v30 }
 0x45d   : > { %2314 = vrot.lane.b32.xlu1 %v5209_v12, %s4834_s24 }
 0x4a4   : > { %v1346_v32 = vpop.f32.mrb[12].mxu1 }
 0x4a5   : > { %v1352_v33 = vpack.c.bf16 %v1346_v32, %v1346_v32  ;;  %v4142_v34 = vpop.f32.mrb[13].mxu1 }
 0x4a6   : > { %v1349_v35 = vpop.f32.mrb[14].mxu1 }
 0x4a7   : > { %v4143_v38 = vpop.f32.mrb[15].mxu1  ;;  %4153 = vmatmul.mubr.msk.bf16.vlgmr.msra.gmra.mrb[16].mxu1 %vm891_vm0, %v1352_v33 }
 0x4a8   : > { %4169 = vmatpush3.bf16.msra.mxu1 %v1537_v37  ;;  %4170 = vmatprep.mubr.msk.bf16.mxu1 %vm4836_vm1, %v4835_v36 }
 0x4a9   : > { %4174 = vmatprep.subr.bf16.mxu1 %v4835_v36 }
 0x4d5   : > { %v2178_v39 = vpop.xlane.xlu1 %2177 }
 0x4d6   : > { %v2179_v40 = vsub.f32 %v2175_v28, %v2178_v39 }
 0x4d8   : > { %v2180_v41 = vmul.f32 1.442695, %v2179_v40 }
 0x4d9   : > { %v1517_v12 = vpop.xlane.xlu1 %1516 }
 0x4da   : > { %4702 = vpow2.f32 %v2180_v41 }
 0x4db   : > { %4704 = vrcp.f32 %v1517_v12 }
 0x4dd   : > { %v2315_v43 = vpop.permute.xlu1 %2314 }
 0x4de   : > { %v4492_v44 = vpack.i.bf16 %v5212_v25, %v2315_v43 }
 0x4e0   : > { %4493 = vxpose.xlu0.b32.start.end [1/1] (short) (narrow) %v4492_v44, 64 }
 0x4e4   : > { %v4703_v46 = vpop.eup %4702 }
 0x4e5   : > { %v4705_v47 = vpop.eup %4704  ;;  %v2182_v49 = vsel %vm1287_vm3, %v4703_v46, 0.0 }
 0x4e6   : > { %v1519_v51 = vmul.f32 %v4705_v47, %v1517_v12  ;;  %2183 = vadd.xlane.f32.xlu1 %v2182_v49 }
 0x4e8   : > { %v1520_v52 = vsub.f32 2.0, %v1519_v51 }
 0x4ea   : > { %v1521_v55 = vmul.f32 %v4705_v47, %v1520_v52  ;;  %1731 = vmax.xlane.f32.xlu1 %v1730_v53  ;;  %v5376_v52 = vpack.c.bf16 %v5291_v1, %v5291_v1  ;;  %v5380_v53 = vpack.c.bf16 %v5207_v22, %v5207_v22  ;;  %v1751_v1 = vpack.c.bf16 %v5183_v13, %v5183_v13 }
 0x4ec   : > { %v5328_v11 = vmul.f32 %v4701_v29, %v1521_v55  ;;  %v2648_v55 = vsel %vm1308_vm2, %v5376_v52, 0 }
 0x4ee   : > { %v1529_v20 = vpack.c.bf16 %v5328_v11, %v5328_v11  ;;  %1956 = vmax.xlane.f32.xlu1 %v1955_v42 }
 0x4f0   : > { %4171 = vmatmul.mubr.msk.bf16.vlgmr.msra.gmra.mrb[20].mxu1 %vm1287_vm3, %v1529_v20 }
 0x4f1   : > { %4182 = vmatprep.mubr.msk.bf16.mxu1 %vm4836_vm1, %v4835_v36  ;;  %4175 = vmatpush3.bf16.msra.mxu1 %v4612_v56 }
 0x4f2   : > { %4176 = vmatprep.subr.bf16.mxu1 %v4835_v36 }
 0x4f5   : > { %4177 = vmatpush3.bf16.msra.mxu1 %v4613_v57  ;;  %v1756_v57 = vsel %vm1308_vm2, %v1751_v1, 0 }
 0x4f6   : > { %4178 = vmatprep.subr.bf16.mxu1 %v4835_v36 }
 0x4f9   : > { %4179 = vmatpush3.bf16.msra.mxu1 %v4614_v58 }
 0x4fa   : > { %4180 = vmatprep.subr.bf16.mxu1 %v4835_v36 }
 0x4fd   : > { %4181 = vmatpush3.bf16.msra.mxu1 %v4615_v59 }
 0x4fe   : > { %4198 = vmatprep.subr.bf16.mxu1 %v4835_v36 }
 0x560   : > { %v4494_v61 = vpop.trf.xlu0 }
 0x561   : > { %v4495_v23 = vunpack.i.l.bf16 %v4494_v61  ;;  %v4498_v39 = vunpack.i.h.bf16 %v4494_v61 }
 0x564   : > { %v4499_v62 = vpop.trf.xlu0 }
 0x565   : > { %v4500_v24 = vunpack.i.l.bf16 %v4499_v62  ;;  %v4503_v40 = vunpack.i.h.bf16 %v4499_v62 }
 0x567   : > { %v2349_v31 = vpack.c.bf16 %v4500_v24, %v4495_v23  ;;  %v2573_v44 = vpack.c.bf16 %v4503_v40, %v4498_v39 }
 0x568   : > { %v4504_v3 = vpop.trf.xlu0 }
 0x569   : > { %v4505_v29 = vunpack.i.l.bf16 %v4504_v3  ;;  %v4508_v12 = vunpack.i.h.bf16 %v4504_v3 }
 0x56c   : > { %v4509_v4 = vpop.trf.xlu0 }
 0x56d   : > { %v4510_v30 = vunpack.i.l.bf16 %v4509_v4  ;;  %v4513_v43 = vunpack.i.h.bf16 %v4509_v4  ;;  %v4616_v4 = vld [vmem:[%s5883_s5 + $0x40] sm:$0xff]  }
 0x56f   : > { %v2350_v34 = vpack.c.bf16 %v4510_v30, %v4505_v29  ;;  %v2574_v47 = vpack.c.bf16 %v4513_v43, %v4508_v12  ;;  %v4619_v30 = vld [vmem:[%s5883_s5 + $0x58] sm:$0xff]  }
 0x570   : > { %v4514_v5 = vpop.trf.xlu0 }
 0x571   : > { %v4515_v32 = vunpack.i.l.bf16 %v4514_v5  ;;  %v4518_v45 = vunpack.i.h.bf16 %v4514_v5 }
 0x573   : > { %v2184_v6 = vpop.xlane.xlu1 %2183 }
 0x574   : > { %4706 = vrcp.f32 %v2184_v6  ;;  %v4519_v7 = vpop.trf.xlu0 }
 0x575   : > { %v4520_v33 = vunpack.i.l.bf16 %v4519_v7 }
 0x577   : > { %v1732_v8 = vpop.xlane.xlu1 %1731  ;;  %v2351_v38 = vpack.c.bf16 %v4520_v33, %v4515_v32 }
 0x578   : > { %v1733_v9 = vsub.f32 %v1729_v50, %v1732_v8  ;;  %v4524_v10 = vpop.trf.xlu0 }
 0x579   : > { %v4525_v35 = vunpack.i.l.bf16 %v4524_v10  ;;  %v4528_v48 = vunpack.i.h.bf16 %v4524_v10 }
 0x57a   : > { %v1734_v14 = vmul.f32 1.442695, %v1733_v9 }
 0x57c   : > { %4708 = vpow2.f32 %v1734_v14  ;;  %v4529_v15 = vpop.trf.xlu0 }
 0x57d   : > { %v4530_v37 = vunpack.i.l.bf16 %v4529_v15  ;;  %v4533_v49 = vunpack.i.h.bf16 %v4529_v15 }
 0x57e   : > { %v4707_v16 = vpop.eup %4706 }
 0x57f   : > { %v2186_v17 = vmul.f32 %v4707_v16, %v2184_v6  ;;  %v2352_v41 = vpack.c.bf16 %v4530_v37, %v4525_v35  ;;  %v2576_v51 = vpack.c.bf16 %v4533_v49, %v4528_v48  ;;  %v4617_v6 = vld [vmem:[%s5883_s5 + $0x48] sm:$0xff]  }
 0x581   : > { %v2187_v18 = vsub.f32 2.0, %v2186_v17 }
 0x583   : > { %v2188_v19 = vmul.f32 %v4707_v16, %v2187_v18  ;;  %v1957_v16 = vpop.xlane.xlu1 %1956 }
 0x584   : > { %v1958_v23 = vsub.f32 %v5326_v54, %v1957_v16 }
 0x585   : > { %v5353_v26 = vmul.f32 %v4703_v46, %v2188_v19  ;;  %v4523_v46 = vunpack.i.h.bf16 %v4519_v7  ;;  %v4618_v7 = vld [vmem:[%s5883_s5 + $0x50] sm:$0xff]  }
 0x586   : > { %v5355_v27 = vpop.eup %4708  ;;  %v1959_v24 = vmul.f32 1.442695, %v1958_v23 }
 0x587   : > { %v2196_v28 = vpack.c.bf16 %v5353_v26, %v5353_v26  ;;  %v1736_v21 = vsel %vm1287_vm3, %v5355_v27, 0.0  ;;  %v2575_v50 = vpack.c.bf16 %v4523_v46, %v4518_v45 }
 0x588   : > { %1737 = vadd.xlane.f32.xlu0 %v1736_v21 }
 0x589   : > { %4261 = vmatmul.mubr.msk.bf16.vlgmr.msra.gmra.mrb[32].mxu0 %vm1287_vm3, %v2196_v28 }
 0x58a   : > { %4277 = vmatpush3.bf16.msra.mxu0 %v2349_v31  ;;  %4284 = vmatprep.mubr.msk.bf16.mxu0 %vm4836_vm1, %v4835_v36 }
 0x58b   : > { %4278 = vmatprep.subr.bf16.mxu0 %v4835_v36 }
 0x58e   : > { %4279 = vmatpush3.bf16.msra.mxu0 %v2350_v34 }
 0x58f   : > { %4280 = vmatprep.subr.bf16.mxu0 %v4835_v36 }
 0x592   : > { %4281 = vmatpush3.bf16.msra.mxu0 %v2351_v38 }
 0x593   : > { %4282 = vmatprep.subr.bf16.mxu0 %v4835_v36 }
 0x596   : > { %4283 = vmatpush3.bf16.msra.mxu0 %v2352_v41 }
 0x597   : > { %4306 = vmatprep.subr.bf16.mxu0 %v4835_v36 }
 0x599   : > { %4285 = vmatmul.mubr.msk.bf16.vlgmr.msra.gmra.mrb[36].mxu0 %vm891_vm0, %v2355_v60 }
 0x59a   : > { %4307 = vmatpush3.bf16.msra.mxu0 %v2573_v44  ;;  %4314 = vmatprep.mubr.msk.bf16.mxu0 %vm4836_vm1, %v4835_v36 }
 0x59b   : > { %4308 = vmatprep.subr.bf16.mxu0 %v4835_v36 }
 0x59e   : > { %4309 = vmatpush3.bf16.msra.mxu0 %v2574_v47 }
 0x59f   : > { %4310 = vmatprep.subr.bf16.mxu0 %v4835_v36 }
 0x5a2   : > { %4311 = vmatpush3.bf16.msra.mxu0 %v2575_v50 }
 0x5a3   : > { %4312 = vmatprep.subr.bf16.mxu0 %v4835_v36 }
 0x5a6   : > { %4313 = vmatpush3.bf16.msra.mxu0 %v2576_v51 }
 0x5a7   : > { %4318 = vmatprep.subr.bf16.mxu0 %v4835_v36 }
 0x5a9   : > { %4315 = vmatmul.mubr.msk.bf16.vlgmr.msra.gmra.mrb[40].mxu0 %vm891_vm0, %v5380_v53 }
 0x5aa   : > { %4319 = vmatpush3.bf16.msra.mxu0 %v2648_v55  ;;  %4320 = vmatprep.mubr.msk.bf16.mxu0 %vm4836_vm1, %v4835_v36 }
 0x5ab   : > { %4336 = vmatprep.subr.bf16.mxu0 %v4835_v36 }
 0x5c3   : > { %v1573_v42 = vpop.f32.mrb[20].mxu1 }
 0x5c4   : > { %v1579_v22 = vpack.c.bf16 %v1573_v42, %v1573_v42  ;;  %v4172_v20 = vpop.f32.mrb[21].mxu1 }
 0x5c5   : > { %v1576_v56 = vpop.f32.mrb[22].mxu1 }
 0x5c6   : > { %v4173_v58 = vpop.f32.mrb[23].mxu1  ;;  %4183 = vmatmul.mubr.msk.bf16.vlgmr.msra.gmra.mrb[16].mxu1 %vm891_vm0, %v1579_v22 }
 0x5c7   : > { %4199 = vmatpush3.bf16.msra.mxu1 %v1756_v57  ;;  %4200 = vmatprep.mubr.msk.bf16.mxu1 %vm4836_vm1, %v4835_v36  ;;  %v4620_v57 = vld [vmem:[%s5883_s5 + $0x60] sm:$0xff]   ;;  %v4622_v58 = vld [vmem:[%s5883_s5 + $0x70] sm:$0xff]  }
 0x5c8   : > { %4204 = vmatprep.subr.bf16.mxu1 %v4835_v36 }
 0x615   : > { %v1738_v59 = vpop.xlane.xlu0 %1737 }
 0x616   : > { %4710 = vrcp.f32 %v1738_v59 }
 0x617   : > { %4712 = vpow2.f32 %v1959_v24 }
 0x620   : > { %v4711_v60 = vpop.eup %4710 }
 0x621   : > { %v1740_v61 = vmul.f32 %v4711_v60, %v1738_v59  ;;  %v4713_v34 = vpop.eup %4712 }
 0x622   : > { %v1961_v54 = vsel %vm1287_vm3, %v4713_v34, 0.0 }
 0x623   : > { %v1741_v13 = vsub.f32 2.0, %v1740_v61 }
 0x625   : > { %v1742_v62 = vmul.f32 %v4711_v60, %v1741_v13 }
 0x627   : > { %v5398_v3 = vmul.f32 %v5355_v27, %v1742_v62 }
 0x629   : > { %v1750_v5 = vpack.c.bf16 %v5398_v3, %v5398_v3 }
 0x62b   : > { %4201 = vmatmul.mubr.msk.bf16.vlgmr.msra.gmra.mrb[24].mxu1 %vm1287_vm3, %v1750_v5 }
 0x62c   : > { %4205 = vmatpush3.bf16.msra.mxu1 %v4616_v4  ;;  %4212 = vmatprep.mubr.msk.bf16.mxu1 %vm4836_vm1, %v4835_v36 }
 0x62d   : > { %4206 = vmatprep.subr.bf16.mxu1 %v4835_v36 }
 0x630   : > { %4207 = vmatpush3.bf16.msra.mxu1 %v4617_v6 }
 0x631   : > { %4208 = vmatprep.subr.bf16.mxu1 %v4835_v36 }
 0x634   : > { %4209 = vmatpush3.bf16.msra.mxu1 %v4618_v7 }
 0x635   : > { %4210 = vmatprep.subr.bf16.mxu1 %v4835_v36 }
 0x638   : > { %4211 = vmatpush3.bf16.msra.mxu1 %v4619_v30 }
 0x639   : > { %4228 = vmatprep.subr.bf16.mxu1 %v4835_v36 }
 0x65c   : > { %v5417_v8 = vpop.f32.mrb[32].mxu0 }
 0x65d   : > { %v4262_v9 = vpop.f32.mrb[33].mxu0 }
 0x65e   : > { %v2241_v10 = vpop.f32.mrb[34].mxu0 }
 0x65f   : > { %v4263_v14 = vpop.f32.mrb[35].mxu0 }
 0x66c   : > { %v2393_v15 = vpop.f32.mrb[36].mxu0 }
 0x66d   : > { %v4286_v17 = vpop.f32.mrb[37].mxu0  ;;  %v2399_v22 = vmul.f32 0.125, %v2393_v15 }
 0x66e   : > { %v2396_v18 = vpop.f32.mrb[38].mxu0 }
 0x66f   : > { %v4287_v19 = vpop.f32.mrb[39].mxu0  ;;  %v2400_v20 = vadd.f32 %v2399_v22, %v5237_v63 }
 0x671   : > { %v2401_v56 = vsel %vm1287_vm3, %v2400_v20, -inf }
 0x67c   : > { %v2614_v27 = vpop.f32.mrb[40].mxu0 }
 0x67d   : > { %v2620_v28 = vmul.f32 0.125, %v2614_v27  ;;  %v4316_v21 = vpop.f32.mrb[41].mxu0 }
 0x67e   : > { %v2617_v29 = vpop.f32.mrb[42].mxu0 }
 0x67f   : > { %v4317_v31 = vpop.f32.mrb[43].mxu0  ;;  %v2621_v32 = vadd.f32 %v2620_v28, %v5237_v63 }
 0x681   : > { %v2622_v33 = vsel %vm1287_vm3, %v2621_v32, -inf }
 0x682   : > { %2623 = vmax.xlane.f32.xlu1 %v2622_v33  ;;  %v4624_v33 = vld [vmem:[%s5883_s5 + $0x80] sm:$0xff]  }
 0x686   : > { %1962 = vadd.xlane.f32.xlu1 %v1961_v54 }
 0x697   : > { %1977 = vrot.lane.b32.xlu1 %v1751_v1, %s4834_s24 }
 0x69b   : > { %2760 = vrot.lane.b32.xlu1 %v5212_v25, %s4834_s24 }
 0x6fe   : > { %v1792_v35 = vpop.f32.mrb[24].mxu1 }
 0x6ff   : > { %v1798_v37 = vpack.c.bf16 %v1792_v35, %v1792_v35  ;;  %v4202_v38 = vpop.f32.mrb[25].mxu1 }
 0x700   : > { %v1795_v39 = vpop.f32.mrb[26].mxu1  ;;  %v4625_v38 = vld [vmem:[%s5883_s5 + $0x88] sm:$0xff]  }
 0x701   : > { %v4203_v40 = vpop.f32.mrb[27].mxu1  ;;  %4213 = vmatmul.mubr.msk.bf16.vlgmr.msra.gmra.mrb[16].mxu1 %vm891_vm0, %v1798_v37  ;;  %v4626_v39 = vld [vmem:[%s5883_s5 + $0x90] sm:$0xff]  }
 0x702   : > { %4230 = vmatprep.mubr.msk.bf16.mxu1 %vm4836_vm1, %v4835_v36  ;;  %v4627_v40 = vld [vmem:[%s5883_s5 + $0x98] sm:$0xff]  }
 0x70f   : > { %v2624_v41 = vpop.xlane.xlu1 %2623 }
 0x710   : > { %v2625_v12 = vsub.f32 %v2621_v32, %v2624_v41 }
 0x712   : > { %v2626_v43 = vmul.f32 1.442695, %v2625_v12  ;;  %v2244_v12 = vpack.c.bf16 %v5417_v8, %v5417_v8 }
 0x713   : > { %v1963_v44 = vpop.xlane.xlu1 %1962 }
 0x714   : > { %4714 = vpow2.f32 %v2626_v43 }
 0x715   : > { %4716 = vrcp.f32 %v1963_v44 }
 0x717   : > { %v1978_v45 = vpop.permute.xlu1 %1977 }
 0x718   : > { %v1983_v46 = vsel %vm1308_vm2, %v1978_v45, 0 }
 0x719   : > { %4229 = vmatpush3.bf16.msra.mxu1 %v1983_v46 }
 0x71a   : > { %4234 = vmatprep.subr.bf16.mxu1 %v4835_v36 }
 0x71b   : > { %v2761_v25 = vpop.permute.xlu1 %2760 }
 0x71c   : > { %2763 = vxpose.xlu0.b32.start.end [1/1] (short) (narrow) %v2761_v25, 64 }
 0x71e   : > { %v4715_v47 = vpop.eup %4714 }
 0x71f   : > { %v4717_v48 = vpop.eup %4716  ;;  %v2628_v49 = vsel %vm1287_vm3, %v4715_v47, 0.0 }
 0x720   : > { %v1965_v50 = vmul.f32 %v4717_v48, %v1963_v44  ;;  %2629 = vadd.xlane.f32.xlu1 %v2628_v49 }
 0x722   : > { %v1966_v51 = vsub.f32 2.0, %v1965_v50 }
 0x724   : > { %v1967_v55 = vmul.f32 %v4717_v48, %v1966_v51 }
 0x726   : > { %v5436_v1 = vmul.f32 %v4713_v34, %v1967_v55 }
 0x728   : > { %v1975_v42 = vpack.c.bf16 %v5436_v1, %v5436_v1 }
 0x72a   : > { %4231 = vmatmul.mubr.msk.bf16.vlgmr.msra.gmra.mrb[28].mxu1 %vm1287_vm3, %v1975_v42 }
 0x72b   : > { %4242 = vmatprep.mubr.msk.bf16.mxu1 %vm4836_vm1, %v4835_v36  ;;  %4235 = vmatpush3.bf16.msra.mxu1 %v4620_v57 }
 0x72c   : > { %4236 = vmatprep.subr.bf16.mxu1 %v4835_v36 }
 0x731   : > { %2800 = vrot.lane.b32.xlu1 %v5380_v53, %s4834_s24  ;;  %v4621_v53 = vld [vmem:[%s5883_s5 + $0x68] sm:$0xff]  }
 0x732   : > { %4237 = vmatpush3.bf16.msra.mxu1 %v4621_v53 }
 0x733   : > { %4238 = vmatprep.subr.bf16.mxu1 %v4835_v36 }
 0x736   : > { %4239 = vmatpush3.bf16.msra.mxu1 %v4622_v58 }
 0x737   : > { %4240 = vmatprep.subr.bf16.mxu1 %v4835_v36 }
 0x745   : > { %4535 = vset.pattern.permute.xlu0 %v4833_v2 }
 0x755   : > { %2402 = vmax.xlane.f32.xlu1 %v2401_v56 }
 0x766   : > { %2423 = vrot.lane.b32.xlu1 %v5289_v0, %s4834_s24  ;;  %v4623_v0 = vld [vmem:[%s5883_s5 + $0x78] sm:$0xff]  }
 0x767   : > { %4241 = vmatpush3.bf16.msra.mxu1 %v4623_v0  ;;  %v4628_v0 = vld [vmem:[%s5883_s5 + $0xa0] sm:$0xff]  }
 0x768   : > { %4264 = vmatprep.subr.bf16.mxu1 %v4835_v36 }
 0x79c   : > { %v2779_v59 = vpop.trf.xlu0 }
 0x7a0   : > { %v2780_v60 = vpop.trf.xlu0 }
 0x7a1   : > { %v2795_v16 = vpack.c.bf16 %v2780_v60, %v2779_v59  ;;  %v4629_v59 = vld [vmem:[%s5883_s5 + $0xa8] sm:$0xff]   ;;  %v4630_v60 = vld [vmem:[%s5883_s5 + $0xb0] sm:$0xff]  }
 0x7a4   : > { %v2781_v13 = vpop.trf.xlu0 }
 0x7a8   : > { %v2782_v62 = vpop.trf.xlu0 }
 0x7a9   : > { %v2796_v18 = vpack.c.bf16 %v2782_v62, %v2781_v13 }
 0x7ac   : > { %v2783_v6 = vpop.trf.xlu0 }
 0x7ad   : > { %v2630_v61 = vpop.xlane.xlu1 %2629 }
 0x7ae   : > { %4718 = vrcp.f32 %v2630_v61 }
 0x7b0   : > { %v2784_v14 = vpop.trf.xlu0 }
 0x7b1   : > { %v2797_v19 = vpack.c.bf16 %v2784_v14, %v2783_v6  ;;  %v2801_v27 = vpop.permute.xlu1 %2800 }
 0x7b4   : > { %v2785_v17 = vpop.trf.xlu0 }
 0x7b8   : > { %v4719_v4 = vpop.eup %4718  ;;  %v2786_v23 = vpop.trf.xlu0 }
 0x7b9   : > { %v2632_v5 = vmul.f32 %v4719_v4, %v2630_v61  ;;  %v2798_v24 = vpack.c.bf16 %v2786_v23, %v2785_v17  ;;  %v4633_v17 = vld [vmem:[%s5883_s5 + $0xc8] sm:$0xff]  }
 0x7bb   : > { %v2633_v7 = vsub.f32 2.0, %v2632_v5 }
 0x7bd   : > { %v2634_v9 = vmul.f32 %v4719_v4, %v2633_v7  ;;  %v4632_v7 = vld [vmem:[%s5883_s5 + $0xc0] sm:$0xff]  }
 0x7bf   : > { %v5466_v10 = vmul.f32 %v4715_v47, %v2634_v9 }
 0x7c1   : > { %v2642_v15 = vpack.c.bf16 %v5466_v10, %v5466_v10 }
 0x7c3   : > { %4321 = vmatmul.mubr.msk.bf16.vlgmr.msra.gmra.mrb[44].mxu0 %vm1287_vm3, %v2642_v15 }
 0x7c4   : > { %4337 = vmatpush3.bf16.msra.mxu0 %v2795_v16  ;;  %4344 = vmatprep.mubr.msk.bf16.mxu0 %vm4836_vm1, %v4835_v36 }
 0x7c5   : > { %4338 = vmatprep.subr.bf16.mxu0 %v4835_v36 }
 0x7c8   : > { %4339 = vmatpush3.bf16.msra.mxu0 %v2796_v18  ;;  %v4635_v18 = vld [vmem:[%s5883_s5 + $0xd8] sm:$0xff]  }
 0x7c9   : > { %4340 = vmatprep.subr.bf16.mxu0 %v4835_v36 }
 0x7cc   : > { %4341 = vmatpush3.bf16.msra.mxu0 %v2797_v19 }
 0x7cd   : > { %4342 = vmatprep.subr.bf16.mxu0 %v4835_v36 }
 0x7d0   : > { %4343 = vmatpush3.bf16.msra.mxu0 %v2798_v24 }
 0x7d3   : > { %4345 = vmatmul.mubr.msk.bf16.vlgmr.msra.gmra.mrb[48].mxu0 %vm891_vm0, %v2801_v27 }
 0x7d4   : > { %3246 = vmatprep.mubr.bf16.mxu0 %v4833_v2 }
 0x7e2   : > { %v2403_v28 = vpop.xlane.xlu1 %2402 }
 0x7e3   : > { %v2404_v21 = vsub.f32 %v2400_v20, %v2403_v28 }
 0x7e5   : > { %v2405_v29 = vmul.f32 1.442695, %v2404_v21 }
 0x7e6   : > { %v2424_v41 = vpop.permute.xlu1 %2423 }
 0x7e7   : > { %4720 = vpow2.f32 %v2405_v29  ;;  %v2429_v43 = vsel %vm1308_vm2, %v2424_v41, 0 }
 0x7f1   : > { %v4721_v30 = vpop.eup %4720 }
 0x7f2   : > { %v2407_v31 = vsel %vm1287_vm3, %v4721_v30, 0.0 }
 0x7f3   : > { %2408 = vadd.xlane.f32.xlu0 %v2407_v31 }
 0x7fd   : > { %v2019_v32 = vpop.f32.mrb[28].mxu1 }
 0x7fe   : > { %v2025_v34 = vpack.c.bf16 %v2019_v32, %v2019_v32  ;;  %v4232_v54 = vpop.f32.mrb[29].mxu1  ;;  %v4636_v32 = vld [vmem:[%s5883_s5 + $0xe0] sm:$0xff]  }
 0x7ff   : > { %v2022_v35 = vpop.f32.mrb[30].mxu1  ;;  %v4638_v54 = vld [vmem:[%s5883_s5 + $0xf0] sm:$0xff]  }
 0x800   : > { %v4233_v37 = vpop.f32.mrb[31].mxu1  ;;  %4243 = vmatmul.mubr.msk.bf16.vlgmr.msra.gmra.mrb[16].mxu1 %vm891_vm0, %v2025_v34  ;;  %v4637_v34 = vld [vmem:[%s5883_s5 + $0xe8] sm:$0xff]   ;;  %v4639_v35 = vld [vmem:[%s5883_s5 + $0xf8] sm:$0xff]  }
 0x801   : > { %4265 = vmatpush3.bf16.msra.mxu1 %v4624_v33  ;;  %4272 = vmatprep.mubr.msk.bf16.mxu1 %vm4836_vm1, %v4835_v36 }
 0x802   : > { %4266 = vmatprep.subr.bf16.mxu1 %v4835_v36 }
 0x805   : > { %4267 = vmatpush3.bf16.msra.mxu1 %v4625_v38 }
 0x806   : > { %4268 = vmatprep.subr.bf16.mxu1 %v4835_v36 }
 0x809   : > { %4269 = vmatpush3.bf16.msra.mxu1 %v4626_v39 }
 0x80a   : > { %4270 = vmatprep.subr.bf16.mxu1 %v4835_v36 }
 0x80d   : > { %4271 = vmatpush3.bf16.msra.mxu1 %v4627_v40 }
 0x80e   : > { %4288 = vmatprep.subr.bf16.mxu1 %v4835_v36 }
 0x810   : > { %4273 = vmatmul.mubr.msk.bf16.vlgmr.msra.gmra.mrb[16].mxu1 %vm891_vm0, %v2244_v12 }
 0x811   : > { %4289 = vmatpush3.bf16.msra.mxu1 %v2429_v43  ;;  %4290 = vmatprep.mubr.msk.bf16.mxu1 %vm4836_vm1, %v4835_v36  ;;  %v4736_v43 = vld [vmem:[%s5019_s30] sm:$0xff]  ;;  %s3702_s30 = sshll.u32 %s5279_s25, 4  ;;  %s5796_s30 = int_to_ptr.vmem [resolvable:$true] %s3702_s30 }
 0x812   : > { %4294 = vmatprep.subr.bf16.mxu1 %v4835_v36 }
 0x880   : > { %v2409_v44 = vpop.xlane.xlu0 %2408 }
 0x881   : > { %4722 = vrcp.f32 %v2409_v44 }
 0x88b   : > { %v4723_v45 = vpop.eup %4722 }
 0x88c   : > { %v2411_v46 = vmul.f32 %v4723_v45, %v2409_v44 }
 0x88e   : > { %v2412_v25 = vsub.f32 2.0, %v2411_v46 }
 0x890   : > { %v2413_v47 = vmul.f32 %v4723_v45, %v2412_v25 }
 0x892   : > { %v5505_v48 = vmul.f32 %v4721_v30, %v2413_v47  ;;  %v3045_v47 = vld [vmem:[%s5924_s17] sm:$0xff]  ;;  %s5905_s17 = sshll.u32 %s4962_s0, 7 }
 0x894   : > { %v2421_v8 = vpack.c.bf16 %v5505_v48, %v5505_v48 }
 0x896   : > { %4291 = vmatmul.mubr.msk.bf16.vlgmr.msra.gmra.mrb[32].mxu1 %vm1287_vm3, %v2421_v8  ;;  %v2684_v49 = vpop.f32.mrb[44].mxu0 }
 0x897   : > { %v4322_v50 = vpop.f32.mrb[45].mxu0  ;;  %4302 = vmatprep.mubr.msk.bf16.mxu1 %vm4836_vm1, %v4835_v36  ;;  %4295 = vmatpush3.bf16.msra.mxu1 %v4628_v0  ;;  %v2690_v19 = vpack.c.bf16 %v2684_v49, %v2684_v49  ;;  %v4666_v0 = vld [vmem:[%s5892_s14 + $0x48] sm:$0xff]  }
 0x898   : > { %v2687_v51 = vpop.f32.mrb[46].mxu0  ;;  %4296 = vmatprep.subr.bf16.mxu1 %v4835_v36 }
 0x899   : > { %v4323_v55 = vpop.f32.mrb[47].mxu0 }
 0x89b   : > { %4297 = vmatpush3.bf16.msra.mxu1 %v4629_v59  ;;  %v4667_v59 = vld [vmem:[%s5892_s14 + $0x8] sm:$0xff]  }
 0x89c   : > { %4298 = vmatprep.subr.bf16.mxu1 %v4835_v36 }
 0x89f   : > { %4299 = vmatpush3.bf16.msra.mxu1 %v4630_v60  ;;  %v4668_v60 = vld [vmem:[%s5892_s14 + $0x50] sm:$0xff]  }
 0x8a0   : > { %4300 = vmatprep.subr.bf16.mxu1 %v4835_v36 }
 0x8a6   : > { %v2839_v42 = vpop.f32.mrb[48].mxu0 }
 0x8a7   : > { %v2845_v22 = vmul.f32 0.125, %v2839_v42  ;;  %v4346_v20 = vpop.f32.mrb[49].mxu0  ;;  %v3053_v42 = vld [vmem:[%s5925_s3] sm:$0xff] }
 0x8a8   : > { %v2842_v56 = vpop.f32.mrb[50].mxu0  ;;  %v4651_v20 = vld [vmem:[%s5891_s13 + $0x64] ss:$16 sps:$4 sm:$0xff]  }
 0x8a9   : > { %v4347_v57 = vpop.f32.mrb[51].mxu0  ;;  %v2846_v53 = vadd.f32 %v2845_v22, %v5237_v63  ;;  %v4631_v63 = vld [vmem:[%s5883_s5 + $0xb8] sm:$0xff]   ;;  %v4642_v22 = vld [vmem:[%s5891_s13 + $0x4] ss:$16 sps:$4 sm:$0xff]   ;;  %v4649_v56 = vld [vmem:[%s5891_s13 + $0x60] ss:$16 sps:$4 sm:$0xff]  }
 0x8aa   : > { %4301 = vmatpush3.bf16.msra.mxu1 %v4631_v63  ;;  %3214 = vmatprep.subr.bf16.mxu0 %v4642_v22  ;;  %v4654_v57 = vld [vmem:[%s5891_s13 + $0xc] ss:$16 sps:$4 sm:$0xff]   ;;  %v4669_v63 = vld [vmem:[%s5892_s14 + $0x10] sm:$0xff]  }
 0x8ab   : > { %v2847_v58 = vsel %vm1287_vm3, %v2846_v53, -inf  ;;  %4324 = vmatprep.subr.bf16.mxu1 %v4835_v36 }
 0x8ac   : > { %2848 = vmax.xlane.f32.xlu1 %v2847_v58  ;;  %v4665_v58 = vld [vmem:[%s5892_s14] sm:$0xff]  }
 0x939   : > { %v2849_v61 = vpop.xlane.xlu1 %2848 }
 0x93a   : > { %v2850_v13 = vsub.f32 %v2846_v53, %v2849_v61  ;;  %v4664_v53 = vld [vmem:[%s5892_s14 + $0x40] sm:$0xff]   ;;  %v4670_v61 = vld [vmem:[%s5892_s14 + $0x58] sm:$0xff]  }
 0x93c   : > { %v2851_v62 = vmul.f32 1.442695, %v2850_v13  ;;  %v4671_v13 = vld [vmem:[%s5892_s14 + $0x18] sm:$0xff]  }
 0x93e   : > { %4724 = vpow2.f32 %v2851_v62  ;;  %v4673_v62 = vld [vmem:[%s5892_s14 + $0x60] sm:$0xff]  }
 0x948   : > { %v4725_v4 = vpop.eup %4724 }
 0x949   : > { %v2853_v5 = vsel %vm1287_vm3, %v4725_v4, 0.0 }
 0x94a   : > { %2854 = vadd.xlane.f32.xlu1 %v2853_v5  ;;  %v4677_v5 = vld [vmem:[%s5892_s14 + $0x68] sm:$0xff]  }
 0x95b   : > { %2869 = vrot.lane.b32.xlu1 %v5376_v52, %s4834_s24  ;;  %v4634_v52 = vld [vmem:[%s5883_s5 + $0xd0] sm:$0xff]   ;;  %s4839_s24 = smov 32  }
 0x95f   : > { %3048 = vperm.xlu1 %4534, %v3045_v47  }
 0x969   : > { %v2465_v6 = vpop.f32.mrb[32].mxu1 }
 0x96a   : > { %v2471_v9 = vpack.c.bf16 %v2465_v6, %v2465_v6  ;;  %v4292_v14 = vpop.f32.mrb[33].mxu1  ;;  %v4679_v6 = vld [vmem:[%s5892_s14 + $0x28] sm:$0xff]  }
 0x96b   : > { %v2468_v15 = vpop.f32.mrb[34].mxu1 }
 0x96c   : > { %v4293_v16 = vpop.f32.mrb[35].mxu1  ;;  %4303 = vmatmul.mubr.msk.bf16.vlgmr.msra.gmra.mrb[16].mxu1 %vm891_vm0, %v2471_v9 }
 0x96d   : > { %4325 = vmatpush3.bf16.msra.mxu1 %v4632_v7  ;;  %4332 = vmatprep.mubr.msk.bf16.mxu1 %vm4836_vm1, %v4835_v36  ;;  %v4681_v7 = vld [vmem:[%s5892_s14 + $0x70] sm:$0xff]   ;;  %v3017_v16 = vlaneseq }
 0x96e   : > { %4326 = vmatprep.subr.bf16.mxu1 %v4835_v36 }
 0x971   : > { %4327 = vmatpush3.bf16.msra.mxu1 %v4633_v17  ;;  %v3018_v17 = vshrl.u32 %v3017_v16, 7  ;;  %v4658_v16 = vld [vmem:[%s5891_s13 + $0x48] ss:$16 sps:$4 sm:$0xff]  }
 0x972   : > { %4328 = vmatprep.subr.bf16.mxu1 %v4835_v36 }
 0x975   : > { %4329 = vmatpush3.bf16.msra.mxu1 %v4634_v52  ;;  %v3029_v52 = vsub.s32 1, %v3018_v17 }
 0x976   : > { %4330 = vmatprep.subr.bf16.mxu1 %v4835_v36 }
 0x979   : > { %4331 = vmatpush3.bf16.msra.mxu1 %v4635_v18 }
 0x97a   : > { %4348 = vmatprep.subr.bf16.mxu1 %v4835_v36 }
 0x97c   : > { %4333 = vmatmul.mubr.msk.bf16.vlgmr.msra.gmra.mrb[16].mxu1 %vm891_vm0, %v2690_v19  ;;  %v3923_v19 = vld [vmem:[%s5884_s6] ss:$0 sm:$0xff] }
 0x97d   : > { %4350 = vmatprep.mubr.msk.bf16.mxu1 %vm4836_vm1, %v4835_v36 }
 0x9d7   : > { %v2855_v23 = vpop.xlane.xlu1 %2854 }
 0x9d8   : > { %4726 = vrcp.f32 %v2855_v23 }
 0x9db   : > { %v2870_v24 = vpop.permute.xlu1 %2869 }
 0x9dc   : > { %v2875_v27 = vsel %vm1308_vm2, %v2870_v24, 0 }
 0x9dd   : > { %4349 = vmatpush3.bf16.msra.mxu1 %v2875_v27  ;;  %v3034_v27 = vsub.s32 3, %v3018_v17 }
 0x9de   : > { %4354 = vmatprep.subr.bf16.mxu1 %v4835_v36 }
 0x9df   : > { %v3049_v47 = vpop.permute.xlu1 %3048 }
 0x9e2   : > { %v4727_v28 = vpop.eup %4726 }
 0x9e3   : > { %v2857_v21 = vmul.f32 %v4727_v28, %v2855_v23  ;;  %v3016_v23 = vld [vmem:[%s5890_s12] sm:$0xff] }
 0x9e5   : > { %v2858_v29 = vsub.f32 2.0, %v2857_v21 }
 0x9e7   : > { %v2859_v30 = vmul.f32 %v4727_v28, %v2858_v29  ;;  %v3924_v28 = vld [vmem:[%s5885_s7] ss:$0 sm:$0xff]  ;;  %v3030_v29 = vrot.slane %v3016_v23, %v3029_v52 }
 0x9e9   : > { %v5557_v31 = vmul.f32 %v4725_v4, %v2859_v30  ;;  %v4675_v4 = vld [vmem:[%s5892_s14 + $0x20] sm:$0xff]  }
 0x9eb   : > { %v2867_v33 = vpack.c.bf16 %v5557_v31, %v5557_v31 }
 0x9ed   : > { %4351 = vmatmul.mubr.msk.bf16.vlgmr.msra.gmra.mrb[36].mxu1 %vm1287_vm3, %v2867_v33 }
 0x9ee   : > { %4355 = vmatpush3.bf16.msra.mxu1 %v4636_v32  ;;  %4362 = vmatprep.mubr.msk.bf16.mxu1 %vm4836_vm1, %v4835_v36  ;;  %v3035_v32 = vrot.slane %v3016_v23, %v3034_v27  ;;  %v4682_v27 = vld [vmem:[%s5892_s14 + $0x90] sm:$0xff]  }
 0x9ef   : > { %4356 = vmatprep.subr.bf16.mxu1 %v4835_v36 }
 0x9f2   : > { %4357 = vmatpush3.bf16.msra.mxu1 %v4637_v34 }
 0x9f3   : > { %4358 = vmatprep.subr.bf16.mxu1 %v4835_v36 }
 0x9f6   : > { %4359 = vmatpush3.bf16.msra.mxu1 %v4638_v54 }
 0x9f7   : > { %4360 = vmatprep.subr.bf16.mxu1 %v4835_v36 }
 0x9fa   : > { %4361 = vmatpush3.bf16.msra.mxu1 %v4639_v35 }
 0x9fb   : > { %4082 = vmatprep.subr.bf16.mxu1 %v4664_v53  ;;  %v3105_v53 = vsub.s32 4, %v3018_v17 }
 0xac0   : > { %v2911_v37 = vpop.f32.mrb[36].mxu1 }
 0xac1   : > { %v2917_v38 = vpack.c.bf16 %v2911_v37, %v2911_v37  ;;  %v4352_v39 = vpop.f32.mrb[37].mxu1 }
 0xac2   : > { %v2914_v40 = vpop.f32.mrb[38].mxu1 }
 0xac3   : > { %v4353_v41 = vpop.f32.mrb[39].mxu1  ;;  %4363 = vmatmul.mubr.msk.bf16.vlgmr.msra.gmra.mrb[16].mxu1 %vm891_vm0, %v2917_v38  ;;  %v3019_v38 = vsub.s32 0, %v3018_v17 }
 0xac4   : > { %4083 = vmatpush3.bf16.msra.mxu1 %v4665_v58  ;;  %v3024_v41 = vsub.s32 2, %v3018_v17 }
 0xac5   : > { %4084 = vmatprep.subr.bf16.mxu1 %v4666_v0  ;;  %v3020_v40 = vrot.slane %v3016_v23, %v3019_v38  ;;  %v3927_v0 = vld [vmem:[%s5889_s11] ss:$0 sm:$0xff] }
 0xac8   : > { %4085 = vmatpush3.bf16.msra.mxu1 %v4667_v59 }
 0xac9   : > { %4086 = vmatprep.subr.bf16.mxu1 %v4668_v60  ;;  %v3110_v60 = vsub.s32 5, %v3018_v17  ;;  %v4663_v17 = vld [vmem:[%s5891_s13 + $0x6c] ss:$16 sps:$4 sm:$0xff]  }
 0xacc   : > { %4087 = vmatpush3.bf16.msra.mxu1 %v4669_v63  ;;  %v3106_v63 = vrot.slane %v3016_v23, %v3105_v53 }
 0xacd   : > { %4088 = vmatprep.subr.bf16.mxu1 %v4670_v61 }
 0xad0   : > { %4089 = vmatpush3.bf16.msra.mxu1 %v4671_v13 }
 0xad1   : > { %4090 = vmatprep.subr.bf16.mxu1 %v4673_v62  ;;  %v3111_v62 = vrot.slane %v3016_v23, %v3110_v60 }
 0xad4   : > { %4091 = vmatpush3.bf16.msra.mxu1 %v4675_v4 }
 0xad5   : > { %4092 = vmatprep.subr.bf16.mxu1 %v4677_v5 }
 0xad8   : > { %4093 = vmatpush3.bf16.msra.mxu1 %v4679_v6 }
 0xad9   : > { %4094 = vmatprep.subr.bf16.mxu1 %v4681_v7  ;;  %v4652_v7 = vld [vmem:[%s5891_s13 + $0x8] ss:$16 sps:$4 sm:$0xff]  }
 0xb96   : > { %v2979_v12 = vpop.f32.mrb[16].mxu1 }
 0xb97   : > { %v5581_v44 = vadd.f32 %v4736_v43, %v2979_v12  ;;  %v4364_v45 = vpop.f32.mrb[17].mxu1  ;;  %v3025_v43 = vrot.slane %v3016_v23, %v3024_v41  ;;  %v4678_v23 = vld [vmem:[%s5892_s14 + $0x88] sm:$0xff]  }
 0xb98   : > { %v2982_v46 = vpop.f32.mrb[18].mxu1 }
 0xb99   : > { %v4365_v25 = vpop.f32.mrb[19].mxu1  ;;  %v2986_v36 = vsel %vm891_vm0, %v5581_v44, 0.0 }
 0xb9a   : > { %2987 = vadd.xlane.f32.xlu0 %v2986_v36  ;;  %v3060_v25 = vld [vmem:[%s5886_s8] sm:$0x7] }
 0xc27   : > { %v2988_v8 = vpop.xlane.xlu0 %2987 }
 0xc28   : > { %v2990_v49 = vmul.f32 0.015625, %v2988_v8 }
 0xc2a   : > { %v5589_v50 = vsub.f32 %v5581_v44, %v2990_v49 }
 0xc2c   : > { %v2992_v51 = vmul.f32 %v5589_v50, %v5589_v50 }
 0xc2e   : > { %v2993_v55 = vsel %vm891_vm0, %v2992_v51, 0.0  ;;  %v3069_v51 = vrot.slane %v3060_v25, %v3029_v52  ;;  %v4672_v52 = vld [vmem:[%s5892_s14 + $0xc0] sm:$0xff]  }
 0xc2f   : > { %2994 = vadd.xlane.f32.xlu0 %v2993_v55 }
 0xc45   : > { %3056 = vperm.xlu0 %4535, %v3053_v42   ;;  %v3075_v42 = vrot.slane %v3060_v25, %v3024_v41 }
 0xc49   : > { %1745 = vrot.lane.b32.xlu0 %v5398_v3, %s4837_s19  ;;  %v4640_v3 = vld [vmem:[%s5891_s13] ss:$16 sps:$4 sm:$0xff]  }
 0xc4a   : > { %3215 = vmatpush1.bf16.msra.mxu0 %v4640_v3 }
 0xc4d   : > { %1970 = vrot.lane.b32.xlu0 %v5436_v1, %s4838_s1  ;;  %v4643_v1 = vld [vmem:[%s5891_s13 + $0x20] ss:$16 sps:$4 sm:$0xff]   ;;  %s5794_s1 = scalar_lea.hbm %s5896_s18, %s5905_s17 }
 0xc51   : > { %2191 = vrot.lane.b32.xlu0 %v5353_v26, %s4839_s24  ;;  %v4645_v26 = vld [vmem:[%s5891_s13 + $0x24] ss:$16 sps:$4 sm:$0xff]   ;;  %s3676_s24 = scalar_lea.sflag [#allocation5], %s5273_s22 }
 0xc52   : > { %3216 = vmatprep.subr.bf16.mxu0 %v4645_v26 }
 0xc53   : > { %3217 = vmatpush1.bf16.msra.mxu0 %v4643_v1 }
 0xc55   : > { %2416 = vrot.lane.b32.xlu0 %v5505_v48, %s4840_s23  ;;  %v4646_v48 = vld [vmem:[%s5891_s13 + $0x40] ss:$16 sps:$4 sm:$0xff]   ;;  %s4737_s23 = scalar_lea.vmem %s5796_s30, 128 }
 0xc56   : > { %p4738_p11 = scmp.ne.s32.totalorder %s5796_s30, %s4737_s23 }
 0xc58   : > { %p4739_p12 = pnand %p4738_p11, %p4979_p5 }
 0xc59   : > { %2637 = vrot.lane.b32.xlu0 %v5466_v10, %s4841_s29  ;;  %v4648_v10 = vld [vmem:[%s5891_s13 + $0x44] ss:$16 sps:$4 sm:$0xff]   ;;  %s4844_s29 = smov [#allocation4]  }
 0xc5a   : > { %3218 = vmatprep.subr.bf16.mxu0 %v4648_v10  ;;  %p4740_p13 = pneg %p4739_p12 }
 0xc5b   : > { %3219 = vmatpush1.bf16.msra.mxu0 %v4646_v48 }
 0xc5c   : > { %3220 = vmatprep.subr.bf16.mxu0 %v4651_v20  ;;  %v3925_v20 = vld [vmem:[%s5887_s9] ss:$0 sm:$0xff] }
 0xc5f   : > { %3221 = vmatpush1.bf16.msra.mxu0 %v4649_v56 }
 0xc60   : > { %3255 = vmatprep.subr.bf16.mxu0 %v4654_v57  ;;  %v3926_v57 = vld [vmem:[%s5888_s10] ss:$0 sm:$0xff] }
 0xcbc   : > { %v2995_v9 = vpop.xlane.xlu0 %2994 }
 0xcbd   : > { %v2996_v14 = vmul.f32 0.015625, %v2995_v9 }
 0xcbf   : > { %v2997_v15 = vadd.f32 1e-05, %v2996_v14  ;;  %v4657_v14 = vld [vmem:[%s5891_s13 + $0x2c] ss:$16 sps:$4 sm:$0xff]  }
 0xcc1   : > { %4728 = vrsqrt.f32 %v2997_v15  ;;  %v4655_v15 = vld [vmem:[%s5891_s13 + $0x28] ss:$16 sps:$4 sm:$0xff]  }
 0xcc4   : > { %v3057_v55 = vpop.permute.xlu0 %3056 }
 0xccb   : > { %v4729_v18 = vpop.eup %4728 }
 0xccc   : > { %v2999_v24 = vmul.f32 %v4729_v18, %v5589_v50  ;;  %v3064_v50 = vrot.slane %v3060_v25, %v3019_v38  ;;  %v4674_v18 = vld [vmem:[%s5892_s14 + $0x80] sm:$0xff]   ;;  %v4693_v38 = vld [vmem:[%s5892_s14 + $0xb0] sm:$0xff]  }
 0xcce   : > { %v3007_v21 = vmul.f32 %v3923_v19, %v2999_v24  ;;  %v4676_v19 = vld [vmem:[%s5892_s14 + $0xc8] sm:$0xff]   ;;  %v4680_v24 = vld [vmem:[%s5892_s14 + $0xd0] sm:$0xff]  }
 0xcd0   : > { %v3015_v30 = vadd.f32 %v3924_v28, %v3007_v21  ;;  %v4683_v28 = vld [vmem:[%s5892_s14 + $0x30] sm:$0xff]   ;;  %v4684_v21 = vld [vmem:[%s5892_s14 + $0xd8] sm:$0xff]  }
 0xcd1   : > { %4095 = vmatpush3.bf16.msra.mxu1 %v4683_v28 }
 0xcd2   : > { %v3031_v33 = vmul.f32 %v3030_v29, %v3015_v30  ;;  %v3021_v12 = vmul.f32 %v3020_v40, %v3015_v30  ;;  %v4685_v29 = vld [vmem:[%s5892_s14 + $0x78] sm:$0xff]  }
 0xcd3   : > { %v4686_v30 = vld [vmem:[%s5892_s14 + $0x98] sm:$0xff]   ;;  %4096 = vmatprep.subr.bf16.mxu1 %v4685_v29 }
 0xcd4   : > { %v3036_v34 = vadd.f32 %v3035_v32, %v3031_v33  ;;  %v3026_v45 = vadd.f32 %v3025_v43, %v3021_v12  ;;  %v4687_v32 = vld [vmem:[%s5892_s14 + $0x38] sm:$0xff]   ;;  %v4688_v33 = vld [vmem:[%s5892_s14 + $0xe0] sm:$0xff]  }
 0xcd5   : > { %4097 = vmatpush3.bf16.msra.mxu1 %v4687_v32  ;;  %v4695_v40 = vld [vmem:[%s5892_s14 + $0xb8] sm:$0xff]  }
 0xcd6   : > { %v3037_v54 = vsub.f32 0.0, %v3036_v34  ;;  %v4689_v34 = vld [vmem:[%s5892_s14 + $0xa0] sm:$0xff]  }
 0xcd8   : > { %v3038_v35 = vmul.f32 1.442695, %v3037_v54  ;;  %v4690_v54 = vld [vmem:[%s5892_s14 + $0xe8] sm:$0xff]  }
 0xcda   : > { %4730 = vpow2.f32 %v3038_v35  ;;  %v4691_v35 = vld [vmem:[%s5892_s14 + $0xa8] sm:$0xff]  }
 0xce4   : > { %v4731_v37 = vpop.eup %4730 }
 0xce5   : > { %v3040_v39 = vadd.f32 1.0, %v4731_v37  ;;  %v4692_v37 = vld [vmem:[%s5892_s14 + $0xf0] sm:$0xff]  }
 0xce7   : > { %4732 = vrcp.f32 %v3040_v39  ;;  %v4694_v39 = vld [vmem:[%s5892_s14 + $0xf8] sm:$0xff]  }
 0xcf1   : > { %v4733_v46 = vpop.eup %4732 }
 0xcf2   : > { %v3043_v36 = vmul.f32 %v4733_v46, %v3026_v45 }
 0xcf4   : > { %v3052_v8 = vrot.slane %v3043_v36, 1  ;;  %v3044_v49 = vrot.slane %v3043_v36, 7  ;;  %v3070_v26 = vmul.f32 %v3069_v51, %v3043_v36 }
 0xcf6   : > { %v3059_v22 = vmul.f32 %v3057_v55, %v3052_v8  ;;  %v3051_v3 = vmul.f32 %v3049_v47, %v3044_v49 }
 0xcf8   : > { %v3065_v1 = vmul.f32 %v3064_v50, %v3051_v3  ;;  %v3076_v10 = vmul.f32 %v3075_v42, %v3059_v22 }
 0xcfa   : > { %v3071_v48 = vadd.f32 %v3070_v26, %v3065_v1 }
 0xcfc   : > { %v3077_v56 = vadd.f32 %v3076_v10, %v3071_v48 }
 0xcfe   : > { %v3085_v58 = vadd.f32 %v3925_v20, %v3077_v56 }
 0xd00   : > { %v3093_v59 = vmul.f32 %v3926_v57, %v3085_v58 }
 0xd02   : > { %v3101_v61 = vadd.f32 %v3927_v0, %v3093_v59 }
 0xd04   : > { %v3102_v13 = vmax.f32 %v3101_v61, 0.0  ;;  %v1746_v61 = vpop.permute.xlu0 %1745 }
 0xd06   : > { %v3107_v4 = vmul.f32 %v3106_v63, %v3102_v13 }
 0xd08   : > { %v3112_v5 = vadd.f32 %v3111_v62, %v3107_v4  ;;  %v1971_v13 = vpop.permute.xlu0 %1970 }
 0xd0a   : > { %v5691_v6 = vadd.f32 %v5581_v44, %v3112_v5  ;;  %v4660_v44 = vld [vmem:[%s5891_s13 + $0x4c] ss:$16 sps:$4 sm:$0xff]  }
 0xd0c   : > { %v3114_v9 = vpack.c.bf16 %v5691_v6, %v5691_v6  ;;  %v2192_v62 = vpop.permute.xlu0 %2191 }
 0xd0e   : > { %3944 = vmatmul.mubr.msk.bf16.vlgmr.msra.gmra.mrb[52].mxu0 %vm891_vm0, %v3114_v9 }
 0xd0f   : > { %3256 = vmatpush1.bf16.msra.mxu0 %v4652_v7  ;;  %3287 = vmatprep.mubr.bf16.mxu0 %v4833_v2  ;;  %v4661_v2 = vld [vmem:[%s5891_s13 + $0x68] ss:$16 sps:$4 sm:$0xff]  }
 0xd10   : > { %3257 = vmatprep.subr.bf16.mxu0 %v4657_v14 }
 0xd13   : > { %3258 = vmatpush1.bf16.msra.mxu0 %v4655_v15 }
 0xd14   : > { %3259 = vmatprep.subr.bf16.mxu0 %v4660_v44 }
 0xd17   : > { %3260 = vmatpush1.bf16.msra.mxu0 %v4658_v16 }
 0xd18   : > { %3261 = vmatprep.subr.bf16.mxu0 %v4663_v17 }
 0xd1b   : > { %3262 = vmatpush1.bf16.msra.mxu0 %v4661_v2 }
 0xd1c   : > { %4104 = vmatprep.subr.bf16.mxu0 %v4672_v52 }
 0xd1e   : > { %3945 = vmatmul.mubr.msk.bf16.vlgmr.msra.gmra.mrb[56].mxu0 %vm891_vm0, %v3114_v9 }
 0xd1f   : > { %4105 = vmatpush3.bf16.msra.mxu0 %v4674_v18 }
 0xd20   : > { %4106 = vmatprep.subr.bf16.mxu0 %v4676_v19 }
 0xd23   : > { %4107 = vmatpush3.bf16.msra.mxu0 %v4678_v23 }
 0xd24   : > { %4108 = vmatprep.subr.bf16.mxu0 %v4680_v24 }
 0xd27   : > { %4109 = vmatpush3.bf16.msra.mxu0 %v4682_v27 }
 0xd28   : > { %4110 = vmatprep.subr.bf16.mxu0 %v4684_v21 }
 0xd2b   : > { %4111 = vmatpush3.bf16.msra.mxu0 %v4686_v30 }
 0xd2c   : > { %4112 = vmatprep.subr.bf16.mxu0 %v4688_v33 }
 0xd2f   : > { %4113 = vmatpush3.bf16.msra.mxu0 %v4689_v34 }
 0xd30   : > { %4114 = vmatprep.subr.bf16.mxu0 %v4690_v54 }
 0xd33   : > { %4115 = vmatpush3.bf16.msra.mxu0 %v4691_v35 }
 0xd34   : > { %4116 = vmatprep.subr.bf16.mxu0 %v4692_v37 }
 0xd37   : > { %4117 = vmatpush3.bf16.msra.mxu0 %v4693_v38 }
 0xd38   : > { %4118 = vmatprep.subr.bf16.mxu0 %v4694_v39 }
 0xd3b   : > { %4119 = vmatpush3.bf16.msra.mxu0 %v4695_v40 }
 0xde1   : > { %v3248_v41 = vpop.f32.mrb[52].mxu0 }
 0xde2   : > { %v3296_v12 = vmax.f32 %v3248_v41, 0.0  ;;  %v3250_v43 = vpop.f32.mrb[53].mxu0 }
 0xde3   : > { %v3297_v45 = vmax.f32 %v3250_v43, 0.0  ;;  %v3252_v46 = vpop.f32.mrb[54].mxu0 }
 0xde4   : > { %v3253_v25 = vpop.f32.mrb[55].mxu0  ;;  %v3300_v47 = vpack.c.bf16 %v3296_v12, %v3296_v12 }
 0xde5   : > { %v3301_v36 = vpack.c.bf16 %v3297_v45, %v3297_v45 }
 0xde7   : > { %3592 = vmatprep.mubr.bf16.mxu1 %v3301_v36 }
 0xde8   : > { %3593 = vmatmul.mubr.bf16.vlgmr.msra.gmra.mrb[40].mxu1 %v3300_v47 }
 0xdf1   : > { %v3289_v8 = vpop.f32.mrb[56].mxu0 }
 0xdf2   : > { %v3298_v49 = vmax.f32 %v3289_v8, 0.0  ;;  %v3291_v50 = vpop.f32.mrb[57].mxu0 }
 0xdf3   : > { %v3299_v51 = vmax.f32 %v3291_v50, 0.0  ;;  %v3293_v55 = vpop.f32.mrb[58].mxu0 }
 0xdf4   : > { %v3294_v42 = vpop.f32.mrb[59].mxu0  ;;  %v3302_v3 = vpack.c.bf16 %v3298_v49, %v3298_v49 }
 0xdf5   : > { %v3303_v22 = vpack.c.bf16 %v3299_v51, %v3299_v51 }
 0xdf7   : > { %3632 = vmatprep.mubr.bf16.mxu0 %v3303_v22 }
 0xdf8   : > { %3633 = vmatmul.mubr.bf16.vlgmr.msra.gmra.mrb[60].mxu0 %v3302_v3 }
 0xebb   : > { %v4098_v26 = vpop.f32.mrb[40].mxu1 }
 0xebc   : > { %v4099_v1 = vpop.f32.mrb[41].mxu1 }
 0xebd   : > { %v4100_v10 = vadd.f32 %v4099_v1, %v4098_v26  ;;  %v4101_v48 = vpop.f32.mrb[42].mxu1 }
 0xebe   : > { %v4102_v20 = vpop.f32.mrb[43].mxu1 }
 0xebf   : > { %v3595_v53 = vadd.f32 %v4100_v10, %v5691_v6  ;;  %v2417_v6 = vpop.permute.xlu0 %2416 }
 0xec3   : > { %v2638_v15 = vpop.permute.xlu0 %2637 }
 0xecb   : > { %v4120_v56 = vpop.f32.mrb[60].mxu0 }
 0xecc   : > { %v4121_v57 = vpop.f32.mrb[61].mxu0 }
 0xecd   : > { %v4122_v58 = vadd.f32 %v4121_v57, %v4120_v56  ;;  %v4123_v0 = vpop.f32.mrb[62].mxu0 }
 0xece   : > { %v4124_v59 = vpop.f32.mrb[63].mxu0 }
 0xecf   : > { %v3635_v60 = vadd.f32 %v4122_v58, %v3595_v53 }
 0xed1   : > { %v3640_v63 = vsel %vm891_vm0, %v3635_v60, 0.0 }
 0xed2   : > { %3641 = vadd.xlane.f32.xlu1 %v3640_v63 }
 0xee3   : > { %1524 = vrot.lane.b32.xlu1 %v5328_v11, %s4842_s27  ;;  %s4741_s27 = sshll.u32 %s4844_s29, 4  ;;  %s4742_s27 = int_to_ptr.vmem [resolvable:$false] %s4741_s27 }
 0xee4   : > { %p4744_p0 = scmp.lt.s32.totalorder %s5796_s30, %s4742_s27 }
 0xf5f   : > { %v3642_v4 = vpop.xlane.xlu1 %3641 }
 0xf60   : > { %v3643_v5 = vmul.f32 0.015625, %v3642_v4 }
 0xf62   : > { %v3644_v7 = vsub.f32 %v3635_v60, %v3643_v5 }
 0xf63   : > { %v1525_v9 = vpop.permute.xlu1 %1524 }
 0xf64   : > { %1528 = vst.msk [vmem:[%s5279_s25] sm:$0xff] %vm1527_vm4, %v1525_v9  ;;  %v3645_v14 = vmul.f32 %v3644_v7, %v3644_v7 }
 0xf65   : > { %1749 = vst.msk [vmem:[%s5279_s25] sm:$0xff] %vm1748_vm5, %v1746_v61 }
 0xf66   : > { %1974 = vst.msk [vmem:[%s5279_s25] sm:$0xff] %vm1973_vm6, %v1971_v13  ;;  %v3646_v11 = vsel %vm891_vm0, %v3645_v14, 0.0 }
 0xf67   : > { %3647 = vadd.xlane.f32.xlu1 %v3646_v11  ;;  %2195 = vst.msk [vmem:[%s5279_s25] sm:$0xff] %vm2194_vm7, %v2192_v62 }
 0xf68   : > { %2420 = vst.msk [vmem:[%s5279_s25] sm:$0xff] %vm2419_vm8, %v2417_v6 }
 0xf69   : > { %2641 = vst.msk [vmem:[%s5279_s25] sm:$0xff] %vm2640_vm9, %v2638_v15 }
 0xf78   : > { %2862 = vrot.lane.b32.xlu1 %v5557_v31, %s4843_s20  ;;  %s4743_s20 = scalar_lea.vmem %s4742_s27, 256 }
 0xf79   : > { %p4745_p1 = scmp.lt.s32.totalorder %s4743_s20, %s4737_s23 }
 0xf7b   : > { %p4746_p2 = por %p4745_p1, %p4744_p0 }
 0xf7d   : > { %p4747_p3 = pnand %p4746_p2, %p4740_p13 }
 0xff4   : > { %v3648_v44 = vpop.xlane.xlu1 %3647 }
 0xff5   : > { %v3649_v16 = vmul.f32 0.015625, %v3648_v44 }
 0xff7   : > { %v3650_v17 = vadd.f32 1e-05, %v3649_v16 }
 0xff8   : > { %v2863_v2 = vpop.permute.xlu1 %2862 }
 0xff9   : > { %4734 = vrsqrt.f32 %v3650_v17  ;;  %2866 = vst.msk [vmem:[%s5279_s25] sm:$0xff] %vm2865_vm10, %v2863_v2 }
 0xffa   : > { %4750 = shalt.err (!%p4747_p3)
}
 0xffb   : > { %s4751_s25 = scalar_lea.hbm %s5794_s1, 128  ;;  %s4755_s29 = scalar_lea.hbm %s5896_s18, 256 }
 0xffc   : > { %p4752_p4 = scmp.ne.s32.totalorder %s5794_s1, %s4751_s25  ;;  %p4756_p9 = scmp.lt.u32.totalorder %s5794_s1, %s5896_s18 }
 0xffd   : > { %p4757_p10 = scmp.lt.u32.totalorder %s4755_s29, %s4751_s25  ;;  %p4759_p12 = scmp.lt.u32.totalorder %s4751_s25, %s5794_s1 }
 0xffe   : > { %p4753_p7 = pnand %p4752_p4, %p4979_p5 }
 0xfff   : > { %p4758_p11 = por %p4757_p10, %p4756_p9 }
0x1000   : > { %p4754_p8 = pneg %p4753_p7 }
0x1001   : > { %p4760_p13 = por %p4759_p12, %p4758_p11 }
0x1003   : > { %p4761_p0 = pnand %p4760_p13, %p4754_p8 }
0x1005   : > { %4764 = shalt.err (!%p4761_p0)
}
0x1006   : > { %4396 = dma.vmem_to_hbm [thread:$0]  (%p4979_p5), %s5796_s30, 128, %s5794_s1, %s3676_s24   ;;  %v4735_v31 = vpop.eup %4734  ;;  %v3978_v52 = vld [vmem:[%s5893_s15] ss:$0 sm:$0xff] }
0x1007   : > { %v3652_v18 = vmul.f32 %v4735_v31, %v3644_v7  ;;  %v3979_v19 = vld [vmem:[%s5894_s16] ss:$0 sm:$0xff]  ;;  %s583_s26 = scalar_lea.vmem [#allocation2], %s3809_s21  ;;  %s5926_s29 = sshll.u32 %s4962_s0, 7 }
0x1008   : > { %s3689_s19 = sshll.u32 %s583_s26, 4  ;;  %s5927_s4 = sld [smem:[#allocation19_spill]]  ;;  %s5836_s19 = int_to_ptr.vmem [resolvable:$true] %s3689_s19 }
0x1009   : > { %v3660_v23 = vmul.f32 %v3978_v52, %v3652_v18  ;;  %s3671_s1 = scalar_lea.sflag [#allocation3], %s5273_s22  ;;  %s4765_s24 = scalar_lea.vmem %s5836_s19, 128 }
0x100a   : > { %p4766_p1 = scmp.ne.s32.totalorder %s5836_s19, %s4765_s24  ;;  %s4845_s21 = smov [#allocation2]  }
0x100b   : > { %v3668_v24 = vadd.f32 %v3979_v19, %v3660_v23  ;;  %s4769_s0 = sshll.u32 %s4845_s21, 4  ;;  %s4770_s0 = int_to_ptr.vmem [resolvable:$false] %s4769_s0 }
0x100c   : > { %p4767_p2 = pnand %p4766_p1, %p4979_p5  ;;  %s4771_s23 = scalar_lea.vmem %s4770_s0, 256 }
0x100d   : > { %3669 = vst.msk [vmem:[%s583_s26] sm:$0xff] %vm891_vm0, %v3668_v24  ;;  %p4772_p4 = scmp.lt.s32.totalorder %s5836_s19, %s4770_s0  ;;  %p4773_p7 = scmp.lt.s32.totalorder %s4771_s23, %s4765_s24 }
0x100e   : > { %s5834_s30 = scalar_lea.hbm %s5927_s4, %s5926_s29  ;;  %p4768_p3 = pneg %p4767_p2 }
0x100f   : > { %p4774_p8 = por %p4773_p7, %p4772_p4 }
0x1011   : > { %p4775_p9 = pnand %p4774_p8, %p4768_p3 }
0x1013   : > { %4778 = shalt.err (!%p4775_p9)
}
0x1014   : > { %s4779_s3 = scalar_lea.hbm %s5834_s30, 128  ;;  %s4783_s17 = scalar_lea.hbm %s5927_s4, 256 }
0x1015   : > { %p4780_p10 = scmp.ne.s32.totalorder %s5834_s30, %s4779_s3  ;;  %p4784_p13 = scmp.lt.u32.totalorder %s5834_s30, %s5927_s4 }
0x1016   : > { %p4785_p0 = scmp.lt.u32.totalorder %s4783_s17, %s4779_s3  ;;  %p4787_p2 = scmp.lt.u32.totalorder %s4779_s3, %s5834_s30 }
0x1017   : > { %p4781_p11 = pnand %p4780_p10, %p4979_p5 }
0x1018   : > { %p4786_p1 = por %p4785_p0, %p4784_p13 }
0x1019   : > { %p4782_p12 = pneg %p4781_p11 }
0x101a   : > { %p4788_p3 = por %p4787_p2, %p4786_p1 }
0x101c   : > { %p4789_p4 = pnand %p4788_p3, %p4782_p12 }
0x101e   : > { %4792 = shalt.err (!%p4789_p4)
}
0x101f   : > { %4395 = dma.vmem_to_hbm [thread:$0]  (%p4979_p5), %s5836_s19, 128, %s5834_s30, %s3671_s1  }
0x1020 PF: > { %s5928_s29 = sld [smem:[#allocation10_spill]]  ;;  %s5929_s27 = sld [smem:[#allocation8_spill]] }
0x1026   : > { %p4406_p7 = scmp.ge.s32.totalorder %s5928_s29, 2  ;;  %s3714_s21 = sand.u32 1, %s5929_s27  }
0x1027   : > { %s3715_s0 = scalar_lea.sflag [#allocation3], %s3714_s21 }
0x1028   : > { %p4400_p8 = pnand %p4406_p7, %p4983_p6 }
0x102a   : > { %4810 = dma.done.wait (!%p4400_p8), %s3715_s0, 128  }
0x102b   : > { %4812 = vsyncadd (!%p4400_p8), %s3715_s0, 4294967168  ;;  %s3724_s23 = scalar_lea.sflag [#allocation5], %s3714_s21 }
0x102c   : > { %4814 = dma.done.wait (!%p4400_p8), %s3724_s23, 128  }
0x102d   : > { %4816 = vsyncadd (!%p4400_p8), %s3724_s23, 4294967168  ;;  %s5931_s30 = sld [smem:[#allocation11_spill]]  ;;  %s5932_s2 = sld [smem:[#allocation9_spill]] }
0x102e   : > { %s5933_s29 = sld [smem:[#allocation12_spill]]  ;;  %s5934_s27 = smov %s4823_s28 }
0x1033   : > { %p32_p5 = scmp.ge.s32.totalorder %s5931_s30, 4   ;;  %s5935_s28 = smov %s5932_s2 }
0x1035   :  { %34 = sbr.rel (!%p32_p5) target bundleno = 12 (0xc), region = 143 }
0x103c   :  { %3729 = vsyncpa [#allocation3], 1 }
0x103d   :  { %3731 = vsyncpa [#allocation3 + $0x1], 1 }
0x103e   :  { %3732 = vsyncpa [#allocation5], 1 }
0x103f   :  { %3734 = vsyncpa [#allocation5 + $0x1], 1 }

</bundles_post_ra>
